<compile_context>
chip_gen: v7x
topology: tpu7x:2x2x1
jax: 0.10.0
libtpu: 0.0.40
codegen_flags: <defaults>
</compile_context>

<pallas_src>
import jax
import jax.numpy as jnp
from jax.experimental import pallas as pl
from jax.experimental.pallas import tpu as pltpu


def mlp_kernel(x_ref, w1_ref, b1_ref, w2_ref, b2_ref, w3_ref, b3_ref, w4_ref, o_ref):
    # Batch lives on the lane axis: x block is [1, tb]; hidden acts are [128, tb].
    x = x_ref[...]                                               # [1, tb]  f32

    # fc1 (in_features=1): outer product on the VPU:
    #   [128, 1] * [1, tb] + [128, 1] -> [128, tb], then ReLU.
    h = jnp.maximum(w1_ref[...] * x + b1_ref[...], 0.0)         # [128, tb] f32

    # fc2: MXU matmul, bf16 inputs, f32 accumulation:  W2 [128,128] @ h [128,tb].
    h = jnp.dot(w2_ref[...], h.astype(jnp.bfloat16),
                preferred_element_type=jnp.float32)
    h = jnp.maximum(h + b2_ref[...], 0.0)                       # [128, tb] f32

    # fc3: same.
    h = jnp.dot(w3_ref[...], h.astype(jnp.bfloat16),
                preferred_element_type=jnp.float32)
    h = jnp.maximum(h + b3_ref[...], 0.0)                       # [128, tb] f32

    # fc4 (out_features=1, no bias): [1,128] @ [128,tb] on the idle MXU.
    # Result is a lane-dense [1, tb] row -> unmasked vector store.
    o_ref[...] = jnp.dot(w4_ref[...], h.astype(jnp.bfloat16),
                         preferred_element_type=jnp.float32)


def mlp_forward(x, params, *, block_b=1024):
    """x: [B, 1] float32. Returns [B, 1] float32."""
    w1, b1, w2, b2, w3, b3, w4 = params
    B = x.shape[0]

    # Lane-dense batch tile: multiple of 128, large enough to amortize the
    # ~0.35 us per-grid-step overhead, small enough for every generation's
    # scoped VMEM (live intermediates ~ tb * 128 * 6 B).
    tb = min(block_b, pl.cdiv(B, 128) * 128)
    tb = max(128, (tb // 128) * 128)
    Bp = pl.cdiv(B, tb) * tb

    # Put the batch on the lane axis: [B, 1] -> [1, B] (row-major relabeling).
    x2 = x.reshape(1, B)
    if Bp != B:
        # Zero tail columns: they compute garbage that is sliced off below.
        x2 = jnp.pad(x2, ((0, 0), (0, Bp - B)))

    # Weights / biases: full-array blocks, same block index every grid step
    # (stay resident in VMEM; total footprint ~100 KiB).
    const = lambda a: pl.BlockSpec(a.shape, lambda i: (0,) * a.ndim)

    out = pl.pallas_call(
        mlp_kernel,
        out_shape=jax.ShapeDtypeStruct((1, Bp), jnp.float32),
        grid=(Bp // tb,),
        in_specs=[
            pl.BlockSpec((1, tb), lambda i: (0, i)),   # x: lane-dense batch tile
            const(w1), const(b1),
            const(w2), const(b2),
            const(w3), const(b3),
            const(w4),
        ],
        out_specs=pl.BlockSpec((1, tb), lambda i: (0, i)),
        compiler_params=pltpu.CompilerParams(dimension_semantics=("parallel",)),
    )(x2, w1, b1, w2, b2, w3, b3, w4)

    if Bp != B:
        out = out[:, :B]
    return out.reshape(B, 1)


def init_params(key):
    # nn.Linear default init: U(-1/sqrt(fan_in), +1/sqrt(fan_in)).
    # Weights kept in PyTorch [out_features, in_features] layout; biases stored
    # as [out_features, 1] columns (broadcast over the lane/batch axis).
    ks = jax.random.split(key, 7)

    def uniform(k, shape, fan_in):
        bound = 1.0 / jnp.sqrt(fan_in)
        return jax.random.uniform(k, shape, jnp.float32, -bound, bound)

    w1 = uniform(ks[0], (128, 1), 1)
    b1 = uniform(ks[1], (128, 1), 1)
    w2 = uniform(ks[2], (128, 128), 128)
    b2 = uniform(ks[3], (128, 1), 128)
    w3 = uniform(ks[4], (128, 128), 128)
    b3 = uniform(ks[5], (128, 1), 128)
    w4 = uniform(ks[6], (1, 128), 128)    # fc4 weight, no bias

    # Pre-cast the MXU weights to bf16 (MXU-native); fc1 weight and all biases
    # stay f32 (f32 elementwise is safe on v5e's VPU and more accurate).
    return (w1, b1,
            w2.astype(jnp.bfloat16), b2,
            w3.astype(jnp.bfloat16), b3,
            w4.astype(jnp.bfloat16))


def reference_forward_f32(x, params):
    """f32 PyTorch-semantics reference.

    Note: w2/w3/w4 were rounded to bf16 at init (master weights are bf16), so
    this is a reference for *this* parameter set, compared at loose tolerance
    against the kernel's bf16-input / f32-accumulate matmuls.
    """
    w1, b1, w2, b2, w3, b3, w4 = params
    h = jnp.maximum(x @ w1.T + b1.T, 0.0)
    h = jnp.maximum(h @ w2.T.astype(jnp.float32) + b2.T, 0.0)
    h = jnp.maximum(h @ w3.T.astype(jnp.float32) + b3.T, 0.0)
    return h @ w4.T.astype(jnp.float32)


def reference_forward_mirrored(x, params):
    """Reference with the kernel's exact layout and dtype policy."""
    w1, b1, w2, b2, w3, b3, w4 = params
    xt = x.reshape(1, -1)                                        # [1, B]
    h = jnp.maximum(w1 * xt + b1, 0.0)
    h = jnp.dot(w2, h.astype(jnp.bfloat16), preferred_element_type=jnp.float32)
    h = jnp.maximum(h + b2, 0.0)
    h = jnp.dot(w3, h.astype(jnp.bfloat16), preferred_element_type=jnp.float32)
    h = jnp.maximum(h + b3, 0.0)
    out = jnp.dot(w4, h.astype(jnp.bfloat16), preferred_element_type=jnp.float32)
    return out.reshape(-1, 1)


if __name__ == "__main__":
    key = jax.random.PRNGKey(0)
    k_x, k_p = jax.random.split(key)

    B = 4096  # four 1024-wide lane-dense tiles -> exercises the parallel grid
    x = jax.random.normal(k_x, (B, 1), dtype=jnp.float32)
    params = init_params(k_p)

    out = jax.block_until_ready(mlp_forward(x, params, block_b=1024))
    assert out.shape == (B, 1), out.shape

    # Tight check vs. a reference using the kernel's exact layout/dtype policy.
    ref_m = reference_forward_mirrored(x, params)
    assert jnp.allclose(out, ref_m, atol=1e-3, rtol=1e-3), \
        float(jnp.max(jnp.abs(out - ref_m)))

    # Loose check vs. the f32 PyTorch-semantics reference (bf16 MXU inputs).
    ref_f = reference_forward_f32(x, params)
    assert jnp.allclose(out, ref_f, atol=5e-2, rtol=5e-2), \
        float(jnp.max(jnp.abs(out - ref_f)))

    print("KERNEL_OK")
</pallas_src>

<mosaic_0001>
module attributes {stable_mosaic.version = 11 : i64} {
  func.func @mlp_kernel(%arg0: i32, %arg1: memref<1x1024xf32, #tpu.memory_space<vmem>>, %arg2: memref<128x1xf32, #tpu.memory_space<vmem>>, %arg3: memref<128x1xf32, #tpu.memory_space<vmem>>, %arg4: memref<128x128xbf16, #tpu.memory_space<vmem>>, %arg5: memref<128x1xf32, #tpu.memory_space<vmem>>, %arg6: memref<128x128xbf16, #tpu.memory_space<vmem>>, %arg7: memref<128x1xf32, #tpu.memory_space<vmem>>, %arg8: memref<1x128xbf16, #tpu.memory_space<vmem>>, %arg9: memref<1x1024xf32, #tpu.memory_space<vmem>>) attributes {dimension_semantics = [#tpu.dimension_semantics<parallel>], iteration_bounds = array<i64: 4>, scalar_prefetch = 0 : i64, scratch_operands = 0 : i64, tpu.core_type = #tpu.core_type<tc>, window_params = [{transform_indices = @transform_0, window_bounds = array<i64: 1, 1024>}, {pipeline_mode = #tpu.pipeline_mode<synchronous>, transform_indices = @transform_1, window_bounds = array<i64: 128, 1>}, {pipeline_mode = #tpu.pipeline_mode<synchronous>, transform_indices = @transform_2, window_bounds = array<i64: 128, 1>}, {pipeline_mode = #tpu.pipeline_mode<synchronous>, transform_indices = @transform_3, window_bounds = array<i64: 128, 128>}, {pipeline_mode = #tpu.pipeline_mode<synchronous>, transform_indices = @transform_4, window_bounds = array<i64: 128, 1>}, {pipeline_mode = #tpu.pipeline_mode<synchronous>, transform_indices = @transform_5, window_bounds = array<i64: 128, 128>}, {pipeline_mode = #tpu.pipeline_mode<synchronous>, transform_indices = @transform_6, window_bounds = array<i64: 128, 1>}, {pipeline_mode = #tpu.pipeline_mode<synchronous>, transform_indices = @transform_7, window_bounds = array<i64: 1, 128>}, {transform_indices = @transform_8, window_bounds = array<i64: 1, 1024>}]} {
    %c0 = arith.constant 0 : index
    %c0_0 = arith.constant 0 : index
    %0 = vector.load %arg1[%c0, %c0_0] : memref<1x1024xf32, #tpu.memory_space<vmem>>, vector<1x1024xf32>
    %c0_1 = arith.constant 0 : index
    %c0_2 = arith.constant 0 : index
    %1 = vector.load %arg2[%c0_1, %c0_2] : memref<128x1xf32, #tpu.memory_space<vmem>>, vector<128x1xf32>
    %2 = vector.broadcast %1 : vector<128x1xf32> to vector<128x1024xf32>
    %3 = vector.broadcast %0 : vector<1x1024xf32> to vector<128x1024xf32>
    %4 = arith.mulf %2, %3 : vector<128x1024xf32>
    %c0_3 = arith.constant 0 : index
    %c0_4 = arith.constant 0 : index
    %5 = vector.load %arg3[%c0_3, %c0_4] : memref<128x1xf32, #tpu.memory_space<vmem>>, vector<128x1xf32>
    %6 = vector.broadcast %5 : vector<128x1xf32> to vector<128x1024xf32>
    %7 = arith.addf %4, %6 : vector<128x1024xf32>
    %cst = arith.constant 0.000000e+00 : f32
    %8 = vector.broadcast %cst : f32 to vector<128x1024xf32>
    %9 = arith.maximumf %7, %8 : vector<128x1024xf32>
    %c0_5 = arith.constant 0 : index
    %c0_6 = arith.constant 0 : index
    %10 = vector.load %arg4[%c0_5, %c0_6] : memref<128x128xbf16, #tpu.memory_space<vmem>>, vector<128x128xbf16>
    %11 = arith.truncf %9 : vector<128x1024xf32> to vector<128x1024xbf16>
    %cst_7 = arith.constant dense<0.000000e+00> : vector<128x1024xf32>
    %12 = tpu.matmul %10, %11, %cst_7 {dimension_numbers = #tpu.dot_dimension_numbers<[1], [0], [0], [1], [0, 0, 1, 1], [], []>} : vector<128x128xbf16>, vector<128x1024xbf16>, vector<128x1024xf32> -> vector<128x1024xf32>
    %c0_8 = arith.constant 0 : index
    %c0_9 = arith.constant 0 : index
    %13 = vector.load %arg5[%c0_8, %c0_9] : memref<128x1xf32, #tpu.memory_space<vmem>>, vector<128x1xf32>
    %14 = vector.broadcast %13 : vector<128x1xf32> to vector<128x1024xf32>
    %15 = arith.addf %12, %14 : vector<128x1024xf32>
    %cst_10 = arith.constant 0.000000e+00 : f32
    %16 = vector.broadcast %cst_10 : f32 to vector<128x1024xf32>
    %17 = arith.maximumf %15, %16 : vector<128x1024xf32>
    %c0_11 = arith.constant 0 : index
    %c0_12 = arith.constant 0 : index
    %18 = vector.load %arg6[%c0_11, %c0_12] : memref<128x128xbf16, #tpu.memory_space<vmem>>, vector<128x128xbf16>
    %19 = arith.truncf %17 : vector<128x1024xf32> to vector<128x1024xbf16>
    %cst_13 = arith.constant dense<0.000000e+00> : vector<128x1024xf32>
    %20 = tpu.matmul %18, %19, %cst_13 {dimension_numbers = #tpu.dot_dimension_numbers<[1], [0], [0], [1], [0, 0, 1, 1], [], []>} : vector<128x128xbf16>, vector<128x1024xbf16>, vector<128x1024xf32> -> vector<128x1024xf32>
    %c0_14 = arith.constant 0 : index
    %c0_15 = arith.constant 0 : index
    %21 = vector.load %arg7[%c0_14, %c0_15] : memref<128x1xf32, #tpu.memory_space<vmem>>, vector<128x1xf32>
    %22 = vector.broadcast %21 : vector<128x1xf32> to vector<128x1024xf32>
    %23 = arith.addf %20, %22 : vector<128x1024xf32>
    %cst_16 = arith.constant 0.000000e+00 : f32
    %24 = vector.broadcast %cst_16 : f32 to vector<128x1024xf32>
    %25 = arith.maximumf %23, %24 : vector<128x1024xf32>
    %c0_17 = arith.constant 0 : index
    %c0_18 = arith.constant 0 : index
    %26 = vector.load %arg8[%c0_17, %c0_18] : memref<1x128xbf16, #tpu.memory_space<vmem>>, vector<1x128xbf16>
    %27 = arith.truncf %25 : vector<128x1024xf32> to vector<128x1024xbf16>
    %cst_19 = arith.constant dense<0.000000e+00> : vector<1x1024xf32>
    %28 = tpu.matmul %26, %27, %cst_19 {dimension_numbers = #tpu.dot_dimension_numbers<[1], [0], [0], [1], [0, 0, 1, 1], [], []>} : vector<1x128xbf16>, vector<128x1024xbf16>, vector<1x1024xf32> -> vector<1x1024xf32>
    %c0_20 = arith.constant 0 : index
    %c0_21 = arith.constant 0 : index
    %29 = vector.load %arg9[%c0_20, %c0_21] : memref<1x1024xf32, #tpu.memory_space<vmem>>, vector<1x1024xf32>
    tpu.vector_store %arg9[%c0_20, %c0_21], %28 {strides = array<i32>} : memref<1x1024xf32, #tpu.memory_space<vmem>>, vector<1x1024xf32>,
    return
  }
  func.func @transform_0(%arg0: i32) -> (i32, i32) {
    %c0_i32 = arith.constant 0 : i32
    %c0_i32_0 = arith.constant 0 : i32
    return %c0_i32, %arg0 : i32, i32
  }
  func.func @transform_1(%arg0: i32) -> (i32, i32) {
    %c0_i32 = arith.constant 0 : i32
    %c0_i32_0 = arith.constant 0 : i32
    %c0_i32_1 = arith.constant 0 : i32
    return %c0_i32, %c0_i32_0 : i32, i32
  }
  func.func @transform_2(%arg0: i32) -> (i32, i32) {
    %c0_i32 = arith.constant 0 : i32
    %c0_i32_0 = arith.constant 0 : i32
    %c0_i32_1 = arith.constant 0 : i32
    return %c0_i32, %c0_i32_0 : i32, i32
  }
  func.func @transform_3(%arg0: i32) -> (i32, i32) {
    %c0_i32 = arith.constant 0 : i32
    %c0_i32_0 = arith.constant 0 : i32
    %c0_i32_1 = arith.constant 0 : i32
    return %c0_i32, %c0_i32_0 : i32, i32
  }
  func.func @transform_4(%arg0: i32) -> (i32, i32) {
    %c0_i32 = arith.constant 0 : i32
    %c0_i32_0 = arith.constant 0 : i32
    %c0_i32_1 = arith.constant 0 : i32
    return %c0_i32, %c0_i32_0 : i32, i32
  }
  func.func @transform_5(%arg0: i32) -> (i32, i32) {
    %c0_i32 = arith.constant 0 : i32
    %c0_i32_0 = arith.constant 0 : i32
    %c0_i32_1 = arith.constant 0 : i32
    return %c0_i32, %c0_i32_0 : i32, i32
  }
  func.func @transform_6(%arg0: i32) -> (i32, i32) {
    %c0_i32 = arith.constant 0 : i32
    %c0_i32_0 = arith.constant 0 : i32
    %c0_i32_1 = arith.constant 0 : i32
    return %c0_i32, %c0_i32_0 : i32, i32
  }
  func.func @transform_7(%arg0: i32) -> (i32, i32) {
    %c0_i32 = arith.constant 0 : i32
    %c0_i32_0 = arith.constant 0 : i32
    %c0_i32_1 = arith.constant 0 : i32
    return %c0_i32, %c0_i32_0 : i32, i32
  }
  func.func @transform_8(%arg0: i32) -> (i32, i32) {
    %c0_i32 = arith.constant 0 : i32
    %c0_i32_0 = arith.constant 0 : i32
    return %c0_i32, %arg0 : i32, i32
  }
}

</mosaic_0001>

<bundles_post_ra>
// kernel: tpu_custom_call.1
= control target key start
LH: loop header
LB: loop body
LE: loop exit
PB: predicated region body
PF: predicated region fallthrough
CT: control target
= control target key end

     0   :  { %13 = vsyncpa [#allocation3], 0  ;;  %s4387_s0 = inlined_call_operand.vmem [shape: f32[1,4096], index: 0, kind: input, shape index: {}]   ;;  %s4388_s1 = inlined_call_operand.vmem [shape: f32[128,1], index: 1, kind: input, shape index: {}]   ;;  %s4389_s2 = inlined_call_operand.vmem [shape: f32[128,1], index: 2, kind: input, shape index: {}]   ;;  %s4390_s3 = inlined_call_operand.vmem [shape: bf16[128,128], index: 3, kind: input, shape index: {}]   ;;  %s4391_s4 = inlined_call_operand.vmem [shape: f32[128,1], index: 4, kind: input, shape index: {}]   ;;  %s4392_s5 = inlined_call_operand.vmem [shape: bf16[128,128], index: 5, kind: input, shape index: {}]   ;;  %s4393_s6 = inlined_call_operand.vmem [shape: f32[128,1], index: 6, kind: input, shape index: {}]   ;;  %s4394_s7 = inlined_call_operand.vmem [shape: bf16[1,128], index: 7, kind: input, shape index: {}]   ;;  %s4395_s8 = inlined_call_operand.hbm [shape: f32[1,4096], index: 8, kind: output, shape index: {}]  }
   0x1   :  { %15 = vsyncpa [#allocation3 + $0x1], 0  ;;  %s3089_s27 = smov 0   ;;  %s3091_s28 = smov 0  }
   0x2   :  { %s3093_s29 = smov 0   ;;  %s3095_s30 = smov 0  }
   0x3 LB: > { %s3110_s9 = sadd.s32 4294967295, %s3039_s30   ;;  %s2890_s10 = sadd.s32 4294967294, %s3039_s30   ;;  %s3039_s30 = sphi %s3095_s30, %s4407_s30   ;;  %s3035_s29 = sphi %s3093_s29, %s4406_s29   ;;  %s3031_s28 = sphi %s3091_s28, %s4405_s28   ;;  %s3027_s27 = sphi %s3089_s27, %s4404_s27  }
   0x4   : > { %s3114_s11 = sadd.s32 1, %s3039_s30   ;;  %s201_s12 = sadd.s32 1, %s3035_s29 }
   0x5   : > { %s198_s13 = ssub.s32 %s3039_s30, %s3114_s11  ;;  %p211_p0 = scmp.ne.s32.totalorder %s3035_s29, %s3031_s28 }
   0x6   : > { %p199_p1 = scmp.eq.s32.totalorder %s198_s13, 0  ;;  %p212_p2 = scmp.eq.s32.totalorder %s3110_s9, 3 }
   0x7   : > { %p217_p3 = scmp.ne.s32.totalorder %s3031_s28, %s3027_s27  ;;  %p218_p4 = scmp.eq.s32.totalorder %s2890_s10, 3 }
   0x8   : > { %s3125_s14 = scalar_select %p199_p1, %s3035_s29, %s201_s12  }
   0x9   : > { %p3127_p5 = por %p212_p2, %p211_p0  ;;  %p3131_p6 = por %p218_p4, %p217_p3 }
   0xa   : > { %p2893_p7 = scmp.ge.s32.totalorder %s3039_s30, 1  ;;  %p265_p8 = scmp.lt.s32.totalorder %s3039_s30, 5 }
   0xc   : > { %p266_p9 = pnand %p2893_p7, %p265_p8 }
   0xe   : > { %269 = sbr.rel (%p266_p9) target bundleno = 1086 (0x43e), region = 52 }
  0x15   : > { %v571_v0 = vld [vmem:[%s4389_s2] sm:$0xff]  ;;  %v4396_v2 = vmov 0   ;;  %v572_v3 = vld [vmem:[%s4389_s2 + $0x8] sm:$0xff]  ;;  %v309_v5 = vld [vmem:[%s4388_s1 + $0x18] sm:$0xff]  ;;  %s2895_s25 = sshll.u32 %s3110_s9, 3  ;;  %v403_v59 = vlaneseq  ;;  %s2917_s17 = sshll.u32 %s3110_s9, 7 }
  0x16   : > { %v306_v1 = vld [vmem:[%s4388_s1] sm:$0xff]  ;;  %2960 = vset.pattern.permute.xlu1 %v4396_v2  ;;  %2959 = vset.pattern.permute.xlu0 %v4396_v2  ;;  %v307_v4 = vld [vmem:[%s4388_s1 + $0x8] sm:$0xff]  ;;  %v308_v6 = vld [vmem:[%s4388_s1 + $0x10] sm:$0xff]  ;;  %p299_p10 = scmp.lt.s32.totalorder %s2895_s25, 31  ;;  %s4345_s21 = scalar_lea.hbm %s4395_s8, %s2917_s17 }
  0x17   : > { %589 = vperm.xlu1 %2960, %v571_v0   ;;  %324 = vperm.xlu0 %2959, %v306_v1   ;;  %v574_v7 = vld [vmem:[%s4389_s2 + $0x18] sm:$0xff]  ;;  %v573_v8 = vld [vmem:[%s4389_s2 + $0x10] sm:$0xff]  ;;  %v311_v9 = vld [vmem:[%s4388_s1 + $0x28] sm:$0xff]  ;;  %v3322_v62 = vshrl.u32 %v403_v59, 7  ;;  %s3043_s9 = smov [#allocation2]  }
  0x18   : > { %1179 = vmatprep.mubr.bf16.mxu0 %v4396_v2  ;;  %1292 = vmatprep.mubr.bf16.mxu1 %v4396_v2  ;;  %v310_v10 = vld [vmem:[%s4388_s1 + $0x20] sm:$0xff]  ;;  %v576_v11 = vld [vmem:[%s4389_s2 + $0x28] sm:$0xff]  ;;  %v313_v13 = vld [vmem:[%s4388_s1 + $0x38] sm:$0xff]  ;;  %s4409_s25 = smov (!%p299_p10, %s2895_s25), 31  ;;  %s2981_s24 = sshll.u32 %s3043_s9, 4  ;;  %s2982_s24 = int_to_ptr.vmem [resolvable:$false] %s2981_s24 }
  0x19   : > { %v575_v12 = vld [vmem:[%s4389_s2 + $0x20] sm:$0xff]  ;;  %v312_v14 = vld [vmem:[%s4388_s1 + $0x30] sm:$0xff]  ;;  %v578_v15 = vld [vmem:[%s4389_s2 + $0x38] sm:$0xff]  ;;  %4401 = vst [vmem:[#allocation5_spill] sm:$0xff] %v3322_v62  ;;  %s301_s12 = scalar_lea.vmem %s4387_s0, %s4409_s25  ;;  %v409_v1 = vsub.s32 1, %v3322_v62  ;;  %s2983_s26 = scalar_lea.vmem %s2982_s24, 256 }
  0x1a   : > { %v577_v16 = vld [vmem:[%s4389_s2 + $0x30] sm:$0xff]  ;;  %v315_v17 = vld [vmem:[%s4388_s1 + $0x48] sm:$0xff]  ;;  %v314_v18 = vld [vmem:[%s4388_s1 + $0x40] sm:$0xff] }
  0x1b   : > { %594 = vperm.xlu1 %2960, %v572_v3   ;;  %329 = vperm.xlu0 %2959, %v307_v4   ;;  %v580_v19 = vld [vmem:[%s4389_s2 + $0x48] sm:$0xff]  ;;  %v579_v20 = vld [vmem:[%s4389_s2 + $0x40] sm:$0xff]  ;;  %v317_v21 = vld [vmem:[%s4388_s1 + $0x58] sm:$0xff]  ;;  %v417_v4 = vsub.s32 3, %v3322_v62 }
  0x1c   : > { %v316_v22 = vld [vmem:[%s4388_s1 + $0x50] sm:$0xff]  ;;  %v582_v23 = vld [vmem:[%s4389_s2 + $0x58] sm:$0xff]  ;;  %v319_v25 = vld [vmem:[%s4388_s1 + $0x68] sm:$0xff] }
  0x1d   : > { %v581_v24 = vld [vmem:[%s4389_s2 + $0x50] sm:$0xff]  ;;  %v318_v26 = vld [vmem:[%s4388_s1 + $0x60] sm:$0xff]  ;;  %v584_v27 = vld [vmem:[%s4389_s2 + $0x68] sm:$0xff] }
  0x1e   : > { %v583_v28 = vld [vmem:[%s4389_s2 + $0x60] sm:$0xff]  ;;  %v321_v29 = vld [vmem:[%s4388_s1 + $0x78] sm:$0xff]  ;;  %v320_v30 = vld [vmem:[%s4388_s1 + $0x70] sm:$0xff] }
  0x1f   : > { %339 = vperm.xlu1 %2960, %v309_v5   ;;  %334 = vperm.xlu0 %2959, %v308_v6   ;;  %v586_v31 = vld [vmem:[%s4389_s2 + $0x78] sm:$0xff]  ;;  %v585_v32 = vld [vmem:[%s4389_s2 + $0x70] sm:$0xff]  ;;  %v1004_v33 = vld [vmem:[%s4391_s4 + $0x8] sm:$0xff]  ;;  %v405_v5 = vsub.s32 0, %v3322_v62  ;;  %v413_v6 = vsub.s32 2, %v3322_v62 }
  0x20   : > { %v1003_v34 = vld [vmem:[%s4391_s4] sm:$0xff]  ;;  %v1006_v35 = vld [vmem:[%s4391_s4 + $0x18] sm:$0xff]  ;;  %v1005_v36 = vld [vmem:[%s4391_s4 + $0x10] sm:$0xff] }
  0x21   : > { %v1008_v37 = vld [vmem:[%s4391_s4 + $0x28] sm:$0xff]  ;;  %v1007_v38 = vld [vmem:[%s4391_s4 + $0x20] sm:$0xff]  ;;  %v1010_v39 = vld [vmem:[%s4391_s4 + $0x38] sm:$0xff] }
  0x22   : > { %v1009_v40 = vld [vmem:[%s4391_s4 + $0x30] sm:$0xff]  ;;  %v1012_v41 = vld [vmem:[%s4391_s4 + $0x48] sm:$0xff]  ;;  %v1011_v42 = vld [vmem:[%s4391_s4 + $0x40] sm:$0xff] }
  0x23   : > { %604 = vperm.xlu1 %2960, %v574_v7   ;;  %599 = vperm.xlu0 %2959, %v573_v8   ;;  %v1014_v43 = vld [vmem:[%s4391_s4 + $0x58] sm:$0xff]  ;;  %v1013_v44 = vld [vmem:[%s4391_s4 + $0x50] sm:$0xff]  ;;  %v1016_v45 = vld [vmem:[%s4391_s4 + $0x68] sm:$0xff] }
  0x24   : > { %v1015_v46 = vld [vmem:[%s4391_s4 + $0x60] sm:$0xff]  ;;  %v1018_v47 = vld [vmem:[%s4391_s4 + $0x78] sm:$0xff]  ;;  %v1017_v48 = vld [vmem:[%s4391_s4 + $0x70] sm:$0xff] }
  0x25   : > { %v1808_v49 = vld [vmem:[%s4393_s6 + $0x8] sm:$0xff]  ;;  %v1807_v50 = vld [vmem:[%s4393_s6] sm:$0xff]  ;;  %v1810_v51 = vld [vmem:[%s4393_s6 + $0x18] sm:$0xff] }
  0x26   : > { %v1809_v52 = vld [vmem:[%s4393_s6 + $0x10] sm:$0xff]  ;;  %v1812_v53 = vld [vmem:[%s4393_s6 + $0x28] sm:$0xff]  ;;  %v1811_v54 = vld [vmem:[%s4393_s6 + $0x20] sm:$0xff] }
  0x27   : > { %349 = vperm.xlu1 %2960, %v311_v9   ;;  %344 = vperm.xlu0 %2959, %v310_v10   ;;  %v1814_v55 = vld [vmem:[%s4393_s6 + $0x38] sm:$0xff]  ;;  %v1813_v56 = vld [vmem:[%s4393_s6 + $0x30] sm:$0xff]  ;;  %v1816_v57 = vld [vmem:[%s4393_s6 + $0x48] sm:$0xff]  ;;  %v425_v9 = vsub.s32 5, %v3322_v62  ;;  %v433_v10 = vsub.s32 7, %v3322_v62 }
  0x28   : > { %v1815_v58 = vld [vmem:[%s4393_s6 + $0x40] sm:$0xff]  ;;  %v1818_v60 = vld [vmem:[%s4393_s6 + $0x58] sm:$0xff]  ;;  %v1817_v61 = vld [vmem:[%s4393_s6 + $0x50] sm:$0xff] }
  0x29   : > { %v1820_v63 = vld [vmem:[%s4393_s6 + $0x68] sm:$0xff]  ;;  %v1819_v0 = vld [vmem:[%s4393_s6 + $0x60] sm:$0xff]  ;;  %v1822_v7 = vld [vmem:[%s4393_s6 + $0x78] sm:$0xff] }
  0x2a   : > { %v305_v3 = vld [vmem:[%s301_s12] sm:$0xff]  ;;  %v1821_v8 = vld [vmem:[%s4393_s6 + $0x70] sm:$0xff]  ;;  %s295_s12 = sand.u32 1, %s3031_s28  }
  0x2b   : > { %614 = vperm.xlu1 %2960, %v576_v11   ;;  %609 = vperm.xlu0 %2959, %v575_v12   ;;  %v421_v11 = vsub.s32 4, %v3322_v62  ;;  %v429_v12 = vsub.s32 6, %v3322_v62  ;;  %s2894_s13 = sshll.u32 %s295_s12, 3  ;;  %s2820_s22 = scalar_lea.sflag [#allocation3], %s295_s12 }
  0x2c   : > { %s297_s18 = scalar_lea.vmem [#allocation2], %s2894_s13 }
  0x2d   : > { %s2834_s19 = sshll.u32 %s297_s18, 4  ;;  %s4347_s19 = int_to_ptr.vmem [resolvable:$true] %s2834_s19 }
  0x2e   : > { %s2977_s23 = scalar_lea.vmem %s4347_s19, 128  ;;  %p2984_p0 = scmp.lt.s32.totalorder %s4347_s19, %s2982_s24 }
  0x2f   : > { %359 = vperm.xlu1 %2960, %v313_v13   ;;  %354 = vperm.xlu0 %2959, %v312_v14   ;;  %v3347_v13 = vrot.slane %v305_v3, %v409_v1  ;;  %v3349_v14 = vrot.slane %v305_v3, %v417_v4  ;;  %p2978_p11 = scmp.ne.s32.totalorder %s4347_s19, %s2977_s23  ;;  %p2985_p1 = scmp.lt.s32.totalorder %s2983_s26, %s2977_s23 }
  0x31   : > { %p2979_p12 = pnand %p2978_p11, %p3127_p5  ;;  %p2986_p2 = por %p2985_p1, %p2984_p0 }
  0x33   : > { %624 = vperm.xlu1 %2960, %v578_v15   ;;  %619 = vperm.xlu0 %2959, %v577_v16   ;;  %v3351_v15 = vrot.slane %v305_v3, %v405_v5  ;;  %v3353_v16 = vrot.slane %v305_v3, %v413_v6  ;;  %p2980_p13 = pneg %p2979_p12 }
  0x35   : > { %p2987_p3 = pnand %p2986_p2, %p2980_p13 }
  0x37   : > { %369 = vperm.xlu1 %2960, %v315_v17   ;;  %364 = vperm.xlu0 %2959, %v314_v18   ;;  %v3355_v17 = vrot.slane %v305_v3, %v425_v9  ;;  %v3357_v18 = vrot.slane %v305_v3, %v433_v10 }
  0x3b   : > { %634 = vperm.xlu1 %2960, %v580_v19   ;;  %629 = vperm.xlu0 %2959, %v579_v20   ;;  %v3359_v19 = vrot.slane %v305_v3, %v421_v11  ;;  %v3361_v20 = vrot.slane %v305_v3, %v429_v12 }
  0x3f   : > { %379 = vperm.xlu1 %2960, %v317_v21   ;;  %374 = vperm.xlu0 %2959, %v316_v22  }
  0x43   : > { %644 = vperm.xlu1 %2960, %v582_v23   ;;  %639 = vperm.xlu0 %2959, %v581_v24  }
  0x47   : > { %389 = vperm.xlu1 %2960, %v319_v25   ;;  %384 = vperm.xlu0 %2959, %v318_v26  }
  0x4b   : > { %654 = vperm.xlu1 %2960, %v584_v27   ;;  %649 = vperm.xlu0 %2959, %v583_v28  }
  0x4f   : > { %399 = vperm.xlu1 %2960, %v321_v29   ;;  %394 = vperm.xlu0 %2959, %v320_v30  }
  0x53   : > { %664 = vperm.xlu1 %2960, %v586_v31   ;;  %659 = vperm.xlu0 %2959, %v585_v32  }
  0x57   : > { %1026 = vperm.xlu1 %2960, %v1004_v33   ;;  %1021 = vperm.xlu0 %2959, %v1003_v34  }
  0x5b   : > { %1036 = vperm.xlu1 %2960, %v1006_v35   ;;  %1031 = vperm.xlu0 %2959, %v1005_v36  }
  0x5f   : > { %1046 = vperm.xlu1 %2960, %v1008_v37   ;;  %1041 = vperm.xlu0 %2959, %v1007_v38  }
  0x63   : > { %1056 = vperm.xlu1 %2960, %v1010_v39   ;;  %1051 = vperm.xlu0 %2959, %v1009_v40  }
  0x67   : > { %1066 = vperm.xlu1 %2960, %v1012_v41   ;;  %1061 = vperm.xlu0 %2959, %v1011_v42  }
  0x6b   : > { %1076 = vperm.xlu1 %2960, %v1014_v43   ;;  %1071 = vperm.xlu0 %2959, %v1013_v44  }
  0x6f   : > { %1086 = vperm.xlu1 %2960, %v1016_v45   ;;  %1081 = vperm.xlu0 %2959, %v1015_v46  }
  0x73   : > { %1096 = vperm.xlu1 %2960, %v1018_v47   ;;  %1091 = vperm.xlu0 %2959, %v1017_v48  }
  0x77   : > { %1830 = vperm.xlu1 %2960, %v1808_v49   ;;  %1825 = vperm.xlu0 %2959, %v1807_v50  }
  0x7b   : > { %1840 = vperm.xlu1 %2960, %v1810_v51   ;;  %1835 = vperm.xlu0 %2959, %v1809_v52  }
  0x7f   : > { %1850 = vperm.xlu1 %2960, %v1812_v53   ;;  %1845 = vperm.xlu0 %2959, %v1811_v54  }
  0x83   : > { %1860 = vperm.xlu1 %2960, %v1814_v55   ;;  %1855 = vperm.xlu0 %2959, %v1813_v56  }
  0x87   : > { %1870 = vperm.xlu1 %2960, %v1816_v57   ;;  %1865 = vperm.xlu0 %2959, %v1815_v58  }
  0x8b   : > { %1880 = vperm.xlu1 %2960, %v1818_v60   ;;  %1875 = vperm.xlu0 %2959, %v1817_v61  }
  0x8f   : > { %1890 = vperm.xlu1 %2960, %v1820_v63   ;;  %1885 = vperm.xlu0 %2959, %v1819_v0  }
  0x93   : > { %1900 = vperm.xlu1 %2960, %v1822_v7   ;;  %1895 = vperm.xlu0 %2959, %v1821_v8  }
  0x96   : > { %v590_v21 = vpop.permute.xlu1 %589  ;;  %v325_v22 = vpop.permute.xlu0 %324 }
  0x97   : > { %v444_v23 = vmul.f32 %v3347_v13, %v325_v22  ;;  %v446_v24 = vmul.f32 %v3349_v14, %v325_v22  ;;  %v443_v25 = vmul.f32 %v3351_v15, %v325_v22  ;;  %v445_v26 = vmul.f32 %v3353_v16, %v325_v22 }
  0x98   : > { %v448_v27 = vmul.f32 %v3355_v17, %v325_v22  ;;  %v450_v28 = vmul.f32 %v3357_v18, %v325_v22  ;;  %v447_v29 = vmul.f32 %v3359_v19, %v325_v22  ;;  %v449_v30 = vmul.f32 %v3361_v20, %v325_v22 }
  0x99   : > { %v668_v31 = vadd.f32 %v590_v21, %v444_v23  ;;  %v670_v32 = vadd.f32 %v590_v21, %v446_v24  ;;  %v667_v33 = vadd.f32 %v590_v21, %v443_v25  ;;  %v669_v34 = vadd.f32 %v590_v21, %v445_v26 }
  0x9a   : > { %v3371_v35 = vpop.permute.xlu1 %594  ;;  %v3373_v36 = vpop.permute.xlu0 %329  ;;  %v3375_v37 = vadd.f32 %v590_v21, %v448_v27  ;;  %v3377_v38 = vadd.f32 %v590_v21, %v450_v28  ;;  %v3383_v41 = vadd.f32 %v590_v21, %v447_v29  ;;  %v3385_v42 = vadd.f32 %v590_v21, %v449_v30 }
  0x9b   : > { %v452_v39 = vmul.f32 %v3347_v13, %v3373_v36  ;;  %v454_v40 = vmul.f32 %v3349_v14, %v3373_v36  ;;  %v796_v43 = vmax.f32 %v668_v31, 0.0  ;;  %v798_v44 = vmax.f32 %v670_v32, 0.0 }
  0x9c   : > { %v451_v45 = vmul.f32 %v3351_v15, %v3373_v36  ;;  %v453_v46 = vmul.f32 %v3353_v16, %v3373_v36  ;;  %v795_v49 = vmax.f32 %v667_v33, 0.0  ;;  %v797_v50 = vmax.f32 %v669_v34, 0.0 }
  0x9d   : > { %v676_v47 = vadd.f32 %v3371_v35, %v452_v39  ;;  %v678_v48 = vadd.f32 %v3371_v35, %v454_v40  ;;  %v456_v55 = vmul.f32 %v3355_v17, %v3373_v36  ;;  %v3403_v56 = vmul.f32 %v3357_v18, %v3373_v36 }
  0x9e   : > { %v3393_v51 = vpop.permute.xlu1 %339  ;;  %v3395_v52 = vpop.permute.xlu0 %334  ;;  %v675_v53 = vadd.f32 %v3371_v35, %v451_v45  ;;  %v677_v54 = vadd.f32 %v3371_v35, %v453_v46 }
  0x9f   : > { %v804_v57 = vmax.f32 %v676_v47, 0.0  ;;  %v806_v58 = vmax.f32 %v678_v48, 0.0  ;;  %v460_v59 = vmul.f32 %v3347_v13, %v3395_v52  ;;  %v468_v60 = vmul.f32 %v3347_v13, %v3393_v51 }
  0xa0   : > { %v803_v61 = vmax.f32 %v675_v53, 0.0  ;;  %v805_v63 = vmax.f32 %v677_v54, 0.0  ;;  %v462_v0 = vmul.f32 %v3349_v14, %v3395_v52  ;;  %v470_v1 = vmul.f32 %v3349_v14, %v3393_v51 }
  0xa1   : > { %v940_v3 = vpack.c.bf16 %v804_v57, %v796_v43  ;;  %v942_v4 = vpack.c.bf16 %v806_v58, %v798_v44  ;;  %v459_v5 = vmul.f32 %v3351_v15, %v3395_v52  ;;  %v467_v6 = vmul.f32 %v3351_v15, %v3393_v51 }
  0xa2   : > { %v3417_v7 = vpop.permute.xlu1 %604  ;;  %v3419_v8 = vpop.permute.xlu0 %599  ;;  %v939_v9 = vpack.c.bf16 %v803_v61, %v795_v49  ;;  %v941_v10 = vpack.c.bf16 %v805_v63, %v797_v50  ;;  %v461_v11 = vmul.f32 %v3353_v16, %v3395_v52  ;;  %v469_v12 = vmul.f32 %v3353_v16, %v3393_v51 }
  0xa3   : > { %1147 = vmatprep.subr.bf16.mxu0 %v940_v3  ;;  %1260 = vmatprep.subr.bf16.mxu1 %v942_v4  ;;  %v684_v21 = vadd.f32 %v3419_v8, %v460_v59  ;;  %v692_v22 = vadd.f32 %v3417_v7, %v468_v60  ;;  %v686_v23 = vadd.f32 %v3419_v8, %v462_v0 }
  0xa4   : > { %1148 = vmatpush1.bf16.msra.mxu0 %v939_v9  ;;  %1261 = vmatpush1.bf16.msra.mxu1 %v941_v10  ;;  %v694_v24 = vadd.f32 %v3417_v7, %v470_v1  ;;  %v683_v25 = vadd.f32 %v3419_v8, %v459_v5  ;;  %v691_v26 = vadd.f32 %v3417_v7, %v467_v6 }
  0xa5   : > { %v812_v27 = vmax.f32 %v684_v21, 0.0  ;;  %v820_v28 = vmax.f32 %v692_v22, 0.0  ;;  %v814_v29 = vmax.f32 %v686_v23, 0.0  ;;  %v685_v30 = vadd.f32 %v3419_v8, %v461_v11 }
  0xa6   : > { %v3432_v31 = vpop.permute.xlu1 %349  ;;  %v3434_v32 = vpop.permute.xlu0 %344  ;;  %v822_v33 = vmax.f32 %v694_v24, 0.0  ;;  %v811_v34 = vmax.f32 %v683_v25, 0.0  ;;  %v819_v39 = vmax.f32 %v691_v26, 0.0  ;;  %v693_v40 = vadd.f32 %v3417_v7, %v469_v12 }
  0xa7   : > { %v948_v43 = vpack.c.bf16 %v820_v28, %v812_v27  ;;  %v813_v44 = vmax.f32 %v685_v30, 0.0  ;;  %v476_v45 = vmul.f32 %v3347_v13, %v3434_v32  ;;  %v484_v46 = vmul.f32 %v3347_v13, %v3432_v31 }
  0xa8   : > { %v950_v47 = vpack.c.bf16 %v822_v33, %v814_v29  ;;  %v947_v48 = vpack.c.bf16 %v819_v39, %v811_v34  ;;  %v821_v49 = vmax.f32 %v693_v40, 0.0  ;;  %v478_v50 = vmul.f32 %v3349_v14, %v3434_v32 }
  0xa9   : > { %1149 = vmatprep.subr.bf16.mxu0 %v948_v43  ;;  %v486_v53 = vmul.f32 %v3349_v14, %v3432_v31  ;;  %v475_v54 = vmul.f32 %v3351_v15, %v3434_v32  ;;  %v483_v57 = vmul.f32 %v3351_v15, %v3432_v31  ;;  %v477_v58 = vmul.f32 %v3353_v16, %v3434_v32 }
  0xaa   : > { %1262 = vmatprep.subr.bf16.mxu1 %v950_v47  ;;  %v3451_v59 = vpop.permute.xlu1 %614  ;;  %v3453_v60 = vpop.permute.xlu0 %609  ;;  %1150 = vmatpush1.bf16.msra.mxu0 %v947_v48  ;;  %v949_v61 = vpack.c.bf16 %v821_v49, %v813_v44  ;;  %v485_v63 = vmul.f32 %v3353_v16, %v3432_v31  ;;  %v3458_v0 = vadd.f32 %v3371_v35, %v456_v55  ;;  %v800_v48 = vmax.f32 %v3375_v37, 0.0 }
  0xab   : > { %v700_v1 = vadd.f32 %v3453_v60, %v476_v45  ;;  %v708_v3 = vadd.f32 %v3451_v59, %v484_v46  ;;  %v702_v4 = vadd.f32 %v3453_v60, %v478_v50  ;;  %v710_v5 = vadd.f32 %v3451_v59, %v486_v53 }
  0xac   : > { %1263 = vmatpush1.bf16.msra.mxu1 %v949_v61  ;;  %v699_v6 = vadd.f32 %v3453_v60, %v475_v54  ;;  %v707_v9 = vadd.f32 %v3451_v59, %v483_v57  ;;  %v701_v10 = vadd.f32 %v3453_v60, %v477_v58  ;;  %v709_v11 = vadd.f32 %v3451_v59, %v485_v63 }
  0xad   : > { %v828_v12 = vmax.f32 %v700_v1, 0.0  ;;  %v836_v55 = vmax.f32 %v708_v3, 0.0  ;;  %v830_v21 = vmax.f32 %v702_v4, 0.0  ;;  %v838_v22 = vmax.f32 %v710_v5, 0.0 }
  0xae   : > { %v3468_v23 = vpop.permute.xlu1 %359  ;;  %v3470_v24 = vpop.permute.xlu0 %354  ;;  %v827_v25 = vmax.f32 %v699_v6, 0.0  ;;  %v835_v26 = vmax.f32 %v707_v9, 0.0  ;;  %v829_v27 = vmax.f32 %v701_v10, 0.0  ;;  %v837_v28 = vmax.f32 %v709_v11, 0.0 }
  0xaf   : > { %v956_v29 = vpack.c.bf16 %v836_v55, %v828_v12  ;;  %v958_v30 = vpack.c.bf16 %v838_v22, %v830_v21  ;;  %v492_v33 = vmul.f32 %v3347_v13, %v3470_v24  ;;  %v500_v34 = vmul.f32 %v3347_v13, %v3468_v23 }
  0xb0   : > { %v955_v39 = vpack.c.bf16 %v835_v26, %v827_v25  ;;  %v957_v40 = vpack.c.bf16 %v837_v28, %v829_v27  ;;  %v494_v43 = vmul.f32 %v3349_v14, %v3470_v24  ;;  %v502_v44 = vmul.f32 %v3349_v14, %v3468_v23 }
  0xb1   : > { %1151 = vmatprep.subr.bf16.mxu0 %v956_v29  ;;  %1264 = vmatprep.subr.bf16.mxu1 %v958_v30  ;;  %v491_v45 = vmul.f32 %v3351_v15, %v3470_v24  ;;  %v499_v46 = vmul.f32 %v3351_v15, %v3468_v23  ;;  %v493_v47 = vmul.f32 %v3353_v16, %v3470_v24  ;;  %v808_v54 = vmax.f32 %v3458_v0, 0.0 }
  0xb2   : > { %v3487_v49 = vpop.permute.xlu1 %624  ;;  %v3489_v50 = vpop.permute.xlu0 %619  ;;  %1152 = vmatpush1.bf16.msra.mxu0 %v955_v39  ;;  %1265 = vmatpush1.bf16.msra.mxu1 %v957_v40  ;;  %v501_v53 = vmul.f32 %v3353_v16, %v3468_v23  ;;  %v3496_v57 = vadd.f32 %v3371_v35, %v3403_v56  ;;  %v455_v58 = vmul.f32 %v3359_v19, %v3373_v36 }
  0xb3   : > { %v716_v37 = vadd.f32 %v3489_v50, %v492_v33  ;;  %v724_v61 = vadd.f32 %v3487_v49, %v500_v34  ;;  %v718_v63 = vadd.f32 %v3489_v50, %v494_v43  ;;  %v726_v1 = vadd.f32 %v3487_v49, %v502_v44 }
  0xb4   : > { %v715_v3 = vadd.f32 %v3489_v50, %v491_v45  ;;  %v723_v4 = vadd.f32 %v3487_v49, %v499_v46  ;;  %v717_v0 = vadd.f32 %v3489_v50, %v493_v47  ;;  %v725_v56 = vadd.f32 %v3487_v49, %v501_v53 }
  0xb5   : > { %v844_v5 = vmax.f32 %v716_v37, 0.0  ;;  %v852_v6 = vmax.f32 %v724_v61, 0.0  ;;  %v846_v9 = vmax.f32 %v718_v63, 0.0  ;;  %v854_v10 = vmax.f32 %v726_v1, 0.0 }
  0xb6   : > { %v3508_v11 = vpop.permute.xlu1 %369  ;;  %v3510_v12 = vpop.permute.xlu0 %364  ;;  %v843_v55 = vmax.f32 %v715_v3, 0.0  ;;  %v851_v21 = vmax.f32 %v723_v4, 0.0  ;;  %v845_v22 = vmax.f32 %v717_v0, 0.0  ;;  %v853_v25 = vmax.f32 %v725_v56, 0.0 }
  0xb7   : > { %v964_v26 = vpack.c.bf16 %v852_v6, %v844_v5  ;;  %v966_v27 = vpack.c.bf16 %v854_v10, %v846_v9  ;;  %v508_v28 = vmul.f32 %v3347_v13, %v3510_v12  ;;  %v516_v29 = vmul.f32 %v3347_v13, %v3508_v11 }
  0xb8   : > { %v963_v30 = vpack.c.bf16 %v851_v21, %v843_v55  ;;  %v965_v33 = vpack.c.bf16 %v853_v25, %v845_v22  ;;  %v510_v34 = vmul.f32 %v3349_v14, %v3510_v12  ;;  %v518_v39 = vmul.f32 %v3349_v14, %v3508_v11 }
  0xb9   : > { %1153 = vmatprep.subr.bf16.mxu0 %v964_v26  ;;  %1266 = vmatprep.subr.bf16.mxu1 %v966_v27  ;;  %v507_v40 = vmul.f32 %v3351_v15, %v3510_v12  ;;  %v515_v43 = vmul.f32 %v3351_v15, %v3508_v11  ;;  %v509_v44 = vmul.f32 %v3353_v16, %v3510_v12  ;;  %v802_v45 = vmax.f32 %v3377_v38, 0.0 }
  0xba   : > { %v3527_v46 = vpop.permute.xlu1 %634  ;;  %v3529_v47 = vpop.permute.xlu0 %629  ;;  %1154 = vmatpush1.bf16.msra.mxu0 %v963_v30  ;;  %1267 = vmatpush1.bf16.msra.mxu1 %v965_v33  ;;  %v517_v53 = vmul.f32 %v3353_v16, %v3508_v11  ;;  %v3533_v37 = vpack.c.bf16 %v808_v54, %v800_v48  ;;  %v810_v61 = vmax.f32 %v3496_v57, 0.0  ;;  %v3537_v63 = vadd.f32 %v3371_v35, %v455_v58 }
  0xbb   : > { %v732_v1 = vadd.f32 %v3529_v47, %v508_v28  ;;  %v740_v38 = vadd.f32 %v3527_v46, %v516_v29  ;;  %v734_v3 = vadd.f32 %v3529_v47, %v510_v34  ;;  %v742_v4 = vadd.f32 %v3527_v46, %v518_v39 }
  0xbc   : > { %v731_v0 = vadd.f32 %v3529_v47, %v507_v40  ;;  %v739_v56 = vadd.f32 %v3527_v46, %v515_v43  ;;  %v733_v48 = vadd.f32 %v3529_v47, %v509_v44  ;;  %v741_v54 = vadd.f32 %v3527_v46, %v517_v53 }
  0xbd   : > { %v860_v57 = vmax.f32 %v732_v1, 0.0  ;;  %v868_v5 = vmax.f32 %v740_v38, 0.0  ;;  %v862_v58 = vmax.f32 %v734_v3, 0.0  ;;  %v870_v6 = vmax.f32 %v742_v4, 0.0 }
  0xbe   : > { %v3547_v9 = vpop.permute.xlu1 %379  ;;  %v3549_v10 = vpop.permute.xlu0 %374  ;;  %v859_v55 = vmax.f32 %v731_v0, 0.0  ;;  %v867_v21 = vmax.f32 %v739_v56, 0.0  ;;  %v861_v22 = vmax.f32 %v733_v48, 0.0  ;;  %v869_v25 = vmax.f32 %v741_v54, 0.0 }
  0xbf   : > { %v972_v26 = vpack.c.bf16 %v868_v5, %v860_v57  ;;  %v974_v27 = vpack.c.bf16 %v870_v6, %v862_v58  ;;  %v524_v28 = vmul.f32 %v3347_v13, %v3549_v10  ;;  %v532_v29 = vmul.f32 %v3347_v13, %v3547_v9 }
  0xc0   : > { %v971_v30 = vpack.c.bf16 %v867_v21, %v859_v55  ;;  %v973_v33 = vpack.c.bf16 %v869_v25, %v861_v22  ;;  %v526_v34 = vmul.f32 %v3349_v14, %v3549_v10  ;;  %v534_v39 = vmul.f32 %v3349_v14, %v3547_v9 }
  0xc1   : > { %1155 = vmatprep.subr.bf16.mxu0 %v972_v26  ;;  %1268 = vmatprep.subr.bf16.mxu1 %v974_v27  ;;  %v523_v40 = vmul.f32 %v3351_v15, %v3549_v10  ;;  %v531_v43 = vmul.f32 %v3351_v15, %v3547_v9  ;;  %v525_v44 = vmul.f32 %v3353_v16, %v3549_v10  ;;  %v799_v53 = vmax.f32 %v3383_v41, 0.0 }
  0xc2   : > { %v3566_v1 = vpop.permute.xlu1 %644  ;;  %v3568_v38 = vpop.permute.xlu0 %639  ;;  %1156 = vmatpush1.bf16.msra.mxu0 %v971_v30  ;;  %1269 = vmatpush1.bf16.msra.mxu1 %v973_v33  ;;  %v533_v3 = vmul.f32 %v3353_v16, %v3547_v9  ;;  %v3572_v4 = vpack.c.bf16 %v810_v61, %v802_v45  ;;  %v807_v0 = vmax.f32 %v3537_v63, 0.0  ;;  %v457_v56 = vmul.f32 %v3361_v20, %v3373_v36 }
  0xc3   : > { %v748_v48 = vadd.f32 %v3568_v38, %v524_v28  ;;  %v756_v41 = vadd.f32 %v3566_v1, %v532_v29  ;;  %v750_v54 = vadd.f32 %v3568_v38, %v526_v34  ;;  %v758_v57 = vadd.f32 %v3566_v1, %v534_v39 }
  0xc4   : > { %v747_v5 = vadd.f32 %v3568_v38, %v523_v40  ;;  %v755_v58 = vadd.f32 %v3566_v1, %v531_v43  ;;  %v749_v45 = vadd.f32 %v3568_v38, %v525_v44  ;;  %v757_v61 = vadd.f32 %v3566_v1, %v533_v3 }
  0xc5   : > { %v876_v63 = vmax.f32 %v748_v48, 0.0  ;;  %v884_v6 = vmax.f32 %v756_v41, 0.0  ;;  %v878_v55 = vmax.f32 %v750_v54, 0.0  ;;  %v886_v36 = vmax.f32 %v758_v57, 0.0 }
  0xc6   : > { %v3585_v21 = vpop.permute.xlu1 %389  ;;  %v3587_v22 = vpop.permute.xlu0 %384  ;;  %v875_v25 = vmax.f32 %v747_v5, 0.0  ;;  %v883_v26 = vmax.f32 %v755_v58, 0.0  ;;  %v877_v27 = vmax.f32 %v749_v45, 0.0  ;;  %v885_v28 = vmax.f32 %v757_v61, 0.0 }
  0xc7   : > { %v980_v29 = vpack.c.bf16 %v884_v6, %v876_v63  ;;  %v982_v30 = vpack.c.bf16 %v886_v36, %v878_v55  ;;  %v540_v33 = vmul.f32 %v3347_v13, %v3587_v22  ;;  %v548_v34 = vmul.f32 %v3347_v13, %v3585_v21 }
  0xc8   : > { %v979_v39 = vpack.c.bf16 %v883_v26, %v875_v25  ;;  %v981_v40 = vpack.c.bf16 %v885_v28, %v877_v27  ;;  %v542_v43 = vmul.f32 %v3349_v14, %v3587_v22  ;;  %v550_v44 = vmul.f32 %v3349_v14, %v3585_v21 }
  0xc9   : > { %1157 = vmatprep.subr.bf16.mxu0 %v980_v29  ;;  %1270 = vmatprep.subr.bf16.mxu1 %v982_v30  ;;  %v539_v3 = vmul.f32 %v3351_v15, %v3587_v22  ;;  %v547_v48 = vmul.f32 %v3351_v15, %v3585_v21  ;;  %v541_v41 = vmul.f32 %v3353_v16, %v3587_v22 }
  0xca   : > { %v3603_v54 = vpop.permute.xlu1 %654  ;;  %v3605_v57 = vpop.permute.xlu0 %649  ;;  %1158 = vmatpush1.bf16.msra.mxu0 %v979_v39  ;;  %1271 = vmatpush1.bf16.msra.mxu1 %v981_v40  ;;  %v549_v5 = vmul.f32 %v3353_v16, %v3585_v21  ;;  %v3609_v58 = vpack.c.bf16 %v807_v0, %v799_v53  ;;  %v681_v45 = vadd.f32 %v3371_v35, %v457_v56 }
  0xcb   : > { %v764_v61 = vadd.f32 %v3605_v57, %v540_v33  ;;  %v772_v63 = vadd.f32 %v3603_v54, %v548_v34  ;;  %v766_v6 = vadd.f32 %v3605_v57, %v542_v43  ;;  %v774_v55 = vadd.f32 %v3603_v54, %v550_v44 }
  0xcc   : > { %v763_v36 = vadd.f32 %v3605_v57, %v539_v3  ;;  %v771_v25 = vadd.f32 %v3603_v54, %v547_v48  ;;  %v765_v26 = vadd.f32 %v3605_v57, %v541_v41  ;;  %v773_v27 = vadd.f32 %v3603_v54, %v549_v5 }
  0xcd   : > { %v892_v53 = vmax.f32 %v764_v61, 0.0  ;;  %v900_v0 = vmax.f32 %v772_v63, 0.0  ;;  %v894_v28 = vmax.f32 %v766_v6, 0.0  ;;  %v902_v35 = vmax.f32 %v774_v55, 0.0 }
  0xce   : > { %v3620_v56 = vpop.permute.xlu1 %399  ;;  %v3622_v29 = vpop.permute.xlu0 %394  ;;  %v891_v30 = vmax.f32 %v763_v36, 0.0  ;;  %v899_v33 = vmax.f32 %v771_v25, 0.0  ;;  %v893_v34 = vmax.f32 %v765_v26, 0.0  ;;  %v901_v39 = vmax.f32 %v773_v27, 0.0 }
  0xcf   : > { %v988_v40 = vpack.c.bf16 %v900_v0, %v892_v53  ;;  %v990_v43 = vpack.c.bf16 %v902_v35, %v894_v28  ;;  %v556_v44 = vmul.f32 %v3347_v13, %v3622_v29  ;;  %v564_v3 = vmul.f32 %v3347_v13, %v3620_v56 }
  0xd0   : > { %v987_v48 = vpack.c.bf16 %v899_v33, %v891_v30  ;;  %v989_v41 = vpack.c.bf16 %v901_v39, %v893_v34  ;;  %v558_v5 = vmul.f32 %v3349_v14, %v3622_v29  ;;  %v566_v61 = vmul.f32 %v3349_v14, %v3620_v56 }
  0xd1   : > { %1159 = vmatprep.subr.bf16.mxu0 %v988_v40  ;;  %1272 = vmatprep.subr.bf16.mxu1 %v990_v43  ;;  %v555_v63 = vmul.f32 %v3351_v15, %v3622_v29  ;;  %v563_v6 = vmul.f32 %v3351_v15, %v3620_v56  ;;  %v557_v55 = vmul.f32 %v3353_v16, %v3622_v29  ;;  %v801_v13 = vmax.f32 %v3385_v42, 0.0 }
  0xd2   : > { %v3639_v36 = vpop.permute.xlu1 %664  ;;  %v3641_v25 = vpop.permute.xlu0 %659  ;;  %1160 = vmatpush1.bf16.msra.mxu0 %v987_v48  ;;  %1273 = vmatpush1.bf16.msra.mxu1 %v989_v41  ;;  %v565_v14 = vmul.f32 %v3353_v16, %v3620_v56  ;;  %v809_v26 = vmax.f32 %v681_v45, 0.0  ;;  %v464_v27 = vmul.f32 %v3355_v17, %v3395_v52  ;;  %v472_v15 = vmul.f32 %v3355_v17, %v3393_v51 }
  0xd3   : > { %v780_v53 = vadd.f32 %v3641_v25, %v556_v44  ;;  %v788_v42 = vadd.f32 %v3639_v36, %v564_v3  ;;  %v782_v0 = vadd.f32 %v3641_v25, %v558_v5  ;;  %v790_v28 = vadd.f32 %v3639_v36, %v566_v61 }
  0xd4   : > { %v779_v35 = vadd.f32 %v3641_v25, %v555_v63  ;;  %v787_v30 = vadd.f32 %v3639_v36, %v563_v6  ;;  %v781_v16 = vadd.f32 %v3641_v25, %v557_v55  ;;  %v789_v45 = vadd.f32 %v3639_v36, %v565_v14  ;;  %v3664_v14 = vld [vmem:[%s4390_s3] sm:$0xff]  }
  0xd5   : > { %v908_v33 = vmax.f32 %v780_v53, 0.0  ;;  %v916_v34 = vmax.f32 %v788_v42, 0.0  ;;  %v910_v39 = vmax.f32 %v782_v0, 0.0  ;;  %v918_v40 = vmax.f32 %v790_v28, 0.0 }
  0xd6   : > { %v907_v43 = vmax.f32 %v779_v35, 0.0  ;;  %v915_v44 = vmax.f32 %v787_v30, 0.0  ;;  %v909_v48 = vmax.f32 %v781_v16, 0.0  ;;  %v917_v3 = vmax.f32 %v789_v45, 0.0 }
  0xd7   : > { %v996_v41 = vpack.c.bf16 %v916_v34, %v908_v33  ;;  %v998_v5 = vpack.c.bf16 %v918_v40, %v910_v39  ;;  %v945_v2 = vpack.c.bf16 %v809_v26, %v801_v13  ;;  %v688_v61 = vadd.f32 %v3419_v8, %v464_v27 }
  0xd8   : > { %v995_v63 = vpack.c.bf16 %v915_v44, %v907_v43  ;;  %v997_v62 = vpack.c.bf16 %v917_v3, %v909_v48  ;;  %v696_v6 = vadd.f32 %v3417_v7, %v472_v15  ;;  %v466_v55 = vmul.f32 %v3357_v18, %v3395_v52 }
  0xd9   : > { %1161 = vmatprep.subr.bf16.mxu0 %v996_v41  ;;  %1274 = vmatprep.subr.bf16.mxu1 %v998_v5  ;;  %v816_v53 = vmax.f32 %v688_v61, 0.0  ;;  %v474_v13 = vmul.f32 %v3357_v18, %v3393_v51  ;;  %v463_v26 = vmul.f32 %v3359_v19, %v3395_v52  ;;  %v471_v27 = vmul.f32 %v3359_v19, %v3393_v51 }
  0xda   : > { %1162 = vmatpush1.bf16.msra.mxu0 %v995_v63  ;;  %1275 = vmatpush1.bf16.msra.mxu1 %v997_v62  ;;  %v824_v15 = vmax.f32 %v696_v6, 0.0  ;;  %v690_v42 = vadd.f32 %v3419_v8, %v466_v55  ;;  %v465_v0 = vmul.f32 %v3361_v20, %v3395_v52  ;;  %v473_v28 = vmul.f32 %v3361_v20, %v3393_v51  ;;  %v3704_v6 = vld [vmem:[%s4390_s3 + $0x8] sm:$0xff]  }
  0xdb   : > { %1373 = vmatprep.subr.bf16.mxu0 %v3533_v37  ;;  %1486 = vmatprep.subr.bf16.mxu1 %v3572_v4  ;;  %v698_v35 = vadd.f32 %v3417_v7, %v474_v13  ;;  %v687_v30 = vadd.f32 %v3419_v8, %v463_v26  ;;  %v695_v16 = vadd.f32 %v3417_v7, %v471_v27  ;;  %v4402_v5 = vmov 0  }
  0xdc   : > { %v952_v62 = vpack.c.bf16 %v824_v15, %v816_v53  ;;  %v818_v45 = vmax.f32 %v690_v42, 0.0  ;;  %v689_v33 = vadd.f32 %v3419_v8, %v465_v0  ;;  %v697_v34 = vadd.f32 %v3417_v7, %v473_v28 }
  0xdd   : > { %1180 = vmatmul.mubr.bf16.vlgmr.msra.gmra.mrb[0].mxu0 %v3664_v14  ;;  %1293 = vmatmul.mubr.bf16.vlgmr.msra.gmra.mrb[0].mxu1 %v3664_v14  ;;  %v826_v51 = vmax.f32 %v698_v35, 0.0  ;;  %v815_v52 = vmax.f32 %v687_v30, 0.0  ;;  %v823_v37 = vmax.f32 %v695_v16, 0.0  ;;  %v480_v4 = vmul.f32 %v3355_v17, %v3434_v32 }
  0xde   : > { %1374 = vmatpush1.bf16.msra.mxu0 %v3609_v58  ;;  %1487 = vmatpush1.bf16.msra.mxu1 %v945_v2  ;;  %v817_v39 = vmax.f32 %v689_v33, 0.0  ;;  %v825_v40 = vmax.f32 %v697_v34, 0.0  ;;  %v488_v8 = vmul.f32 %v3355_v17, %v3432_v31  ;;  %v482_v7 = vmul.f32 %v3357_v18, %v3434_v32 }
  0xdf   : > { %1375 = vmatprep.subr.bf16.mxu0 %v952_v62  ;;  %v954_v43 = vpack.c.bf16 %v826_v51, %v818_v45  ;;  %v951_v44 = vpack.c.bf16 %v823_v37, %v815_v52  ;;  %v704_v48 = vadd.f32 %v3453_v60, %v480_v4  ;;  %v490_v3 = vmul.f32 %v3357_v18, %v3432_v31 }
  0xe0   : > { %v953_v41 = vpack.c.bf16 %v825_v40, %v817_v39  ;;  %v712_v58 = vadd.f32 %v3451_v59, %v488_v8  ;;  %v706_v2 = vadd.f32 %v3453_v60, %v482_v7  ;;  %1189 = vmatprep.mubr.bf16.mxu0 %v4402_v5  ;;  %1302 = vmatprep.mubr.bf16.mxu1 %v4402_v5 }
  0xe1   : > { %1488 = vmatprep.subr.bf16.mxu1 %v954_v43  ;;  %v832_v61 = vmax.f32 %v704_v48, 0.0  ;;  %v714_v63 = vadd.f32 %v3451_v59, %v490_v3  ;;  %v479_v55 = vmul.f32 %v3359_v19, %v3434_v32  ;;  %v487_v53 = vmul.f32 %v3359_v19, %v3432_v31 }
  0xe2   : > { %1376 = vmatpush1.bf16.msra.mxu0 %v951_v44  ;;  %1489 = vmatpush1.bf16.msra.mxu1 %v953_v41  ;;  %v840_v13 = vmax.f32 %v712_v58, 0.0  ;;  %v834_v26 = vmax.f32 %v706_v2, 0.0  ;;  %v481_v27 = vmul.f32 %v3361_v20, %v3434_v32  ;;  %v489_v15 = vmul.f32 %v3361_v20, %v3432_v31  ;;  %v3746_v2 = vld [vmem:[%s4390_s3 + $0x10] sm:$0xff]  }
  0xe3   : > { %v842_v42 = vmax.f32 %v714_v63, 0.0  ;;  %v703_v0 = vadd.f32 %v3453_v60, %v479_v55  ;;  %v711_v28 = vadd.f32 %v3451_v59, %v487_v53  ;;  %v496_v35 = vmul.f32 %v3355_v17, %v3470_v24 }
  0xe4   : > { %v960_v30 = vpack.c.bf16 %v840_v13, %v832_v61  ;;  %v705_v16 = vadd.f32 %v3453_v60, %v481_v27  ;;  %v713_v62 = vadd.f32 %v3451_v59, %v489_v15  ;;  %v504_v45 = vmul.f32 %v3355_v17, %v3468_v23 }
  0xe5   : > { %v962_v32 = vpack.c.bf16 %v842_v42, %v834_v26  ;;  %1190 = vmatmul.mubr.bf16.gmra.mrb[4].mxu0 %v3704_v6  ;;  %1303 = vmatmul.mubr.bf16.gmra.mrb[4].mxu1 %v3704_v6  ;;  %v831_v31 = vmax.f32 %v703_v0, 0.0  ;;  %v839_v33 = vmax.f32 %v711_v28, 0.0  ;;  %v720_v34 = vadd.f32 %v3489_v50, %v496_v35 }
  0xe6   : > { %1377 = vmatprep.subr.bf16.mxu0 %v960_v30  ;;  %v833_v51 = vmax.f32 %v705_v16, 0.0  ;;  %v841_v52 = vmax.f32 %v713_v62, 0.0  ;;  %v728_v37 = vadd.f32 %v3487_v49, %v504_v45  ;;  %v498_v59 = vmul.f32 %v3357_v18, %v3470_v24  ;;  %1199 = vmatprep.mubr.bf16.mxu0 %v4402_v5 }
  0xe7   : > { %1490 = vmatprep.subr.bf16.mxu1 %v962_v32  ;;  %v959_v60 = vpack.c.bf16 %v839_v33, %v831_v31  ;;  %v848_v4 = vmax.f32 %v720_v34, 0.0  ;;  %v506_v39 = vmul.f32 %v3357_v18, %v3468_v23  ;;  %v495_v40 = vmul.f32 %v3359_v19, %v3470_v24  ;;  %1312 = vmatprep.mubr.bf16.mxu1 %v4402_v5 }
  0xe8   : > { %v961_v8 = vpack.c.bf16 %v841_v52, %v833_v51  ;;  %v856_v7 = vmax.f32 %v728_v37, 0.0  ;;  %v722_v43 = vadd.f32 %v3489_v50, %v498_v59  ;;  %v503_v44 = vmul.f32 %v3359_v19, %v3468_v23 }
  0xe9   : > { %1378 = vmatpush1.bf16.msra.mxu0 %v959_v60  ;;  %v730_v48 = vadd.f32 %v3487_v49, %v506_v39  ;;  %v719_v3 = vadd.f32 %v3489_v50, %v495_v40  ;;  %v497_v41 = vmul.f32 %v3361_v20, %v3470_v24  ;;  %v505_v58 = vmul.f32 %v3361_v20, %v3468_v23 }
  0xea   : > { %1491 = vmatpush1.bf16.msra.mxu1 %v961_v8  ;;  %v968_v61 = vpack.c.bf16 %v856_v7, %v848_v4  ;;  %v850_v63 = vmax.f32 %v722_v43, 0.0  ;;  %v727_v55 = vadd.f32 %v3487_v49, %v503_v44  ;;  %v512_v53 = vmul.f32 %v3355_v17, %v3510_v12  ;;  %v3782_v8 = vld [vmem:[%s4390_s3 + $0x18] sm:$0xff]  }
  0xeb   : > { %v858_v13 = vmax.f32 %v730_v48, 0.0  ;;  %v847_v26 = vmax.f32 %v719_v3, 0.0  ;;  %v721_v24 = vadd.f32 %v3489_v50, %v497_v41  ;;  %v729_v27 = vadd.f32 %v3487_v49, %v505_v58 }
  0xec   : > { %1379 = vmatprep.subr.bf16.mxu0 %v968_v61  ;;  %v855_v23 = vmax.f32 %v727_v55, 0.0  ;;  %v520_v15 = vmul.f32 %v3355_v17, %v3508_v11  ;;  %v736_v42 = vadd.f32 %v3529_v47, %v512_v53  ;;  %v514_v0 = vmul.f32 %v3357_v18, %v3510_v12 }
  0xed   : > { %v970_v28 = vpack.c.bf16 %v858_v13, %v850_v63  ;;  %v849_v35 = vmax.f32 %v721_v24, 0.0  ;;  %v857_v30 = vmax.f32 %v729_v27, 0.0  ;;  %v522_v16 = vmul.f32 %v3357_v18, %v3508_v11  ;;  %1200 = vmatmul.mubr.bf16.gmra.mrb[8].mxu0 %v3746_v2  ;;  %1313 = vmatmul.mubr.bf16.gmra.mrb[8].mxu1 %v3746_v2 }
  0xee   : > { %v967_v49 = vpack.c.bf16 %v855_v23, %v847_v26  ;;  %v744_v50 = vadd.f32 %v3527_v46, %v520_v15  ;;  %v864_v62 = vmax.f32 %v736_v42, 0.0  ;;  %v738_v45 = vadd.f32 %v3529_v47, %v514_v0  ;;  %1209 = vmatprep.mubr.bf16.mxu0 %v4402_v5  ;;  %1322 = vmatprep.mubr.bf16.mxu1 %v4402_v5 }
  0xef   : > { %1492 = vmatprep.subr.bf16.mxu1 %v970_v28  ;;  %v969_v32 = vpack.c.bf16 %v857_v30, %v849_v35  ;;  %v746_v31 = vadd.f32 %v3527_v46, %v522_v16  ;;  %v511_v33 = vmul.f32 %v3359_v19, %v3510_v12  ;;  %v519_v34 = vmul.f32 %v3359_v19, %v3508_v11 }
  0xf0   : > { %1380 = vmatpush1.bf16.msra.mxu0 %v967_v49  ;;  %v872_v51 = vmax.f32 %v744_v50, 0.0  ;;  %v866_v52 = vmax.f32 %v738_v45, 0.0  ;;  %v513_v37 = vmul.f32 %v3361_v20, %v3510_v12  ;;  %v521_v59 = vmul.f32 %v3361_v20, %v3508_v11 }
  0xf1   : > { %1493 = vmatpush1.bf16.msra.mxu1 %v969_v32  ;;  %v874_v60 = vmax.f32 %v746_v31, 0.0  ;;  %v735_v4 = vadd.f32 %v3529_v47, %v511_v33  ;;  %v743_v39 = vadd.f32 %v3527_v46, %v519_v34  ;;  %v528_v40 = vmul.f32 %v3355_v17, %v3549_v10  ;;  %v3822_v34 = vld [vmem:[%s4390_s3 + $0x20] sm:$0xff]  }
  0xf2   : > { %v976_v7 = vpack.c.bf16 %v872_v51, %v864_v62  ;;  %v737_v12 = vadd.f32 %v3529_v47, %v513_v37  ;;  %v745_v43 = vadd.f32 %v3527_v46, %v521_v59  ;;  %v536_v11 = vmul.f32 %v3355_v17, %v3547_v9 }
  0xf3   : > { %v978_v44 = vpack.c.bf16 %v874_v60, %v866_v52  ;;  %v863_v48 = vmax.f32 %v735_v4, 0.0  ;;  %v871_v3 = vmax.f32 %v743_v39, 0.0  ;;  %v752_v41 = vadd.f32 %v3568_v38, %v528_v40 }
  0xf4   : > { %1381 = vmatprep.subr.bf16.mxu0 %v976_v7  ;;  %v865_v58 = vmax.f32 %v737_v12, 0.0  ;;  %v873_v61 = vmax.f32 %v745_v43, 0.0  ;;  %v760_v63 = vadd.f32 %v3566_v1, %v536_v11  ;;  %v530_v55 = vmul.f32 %v3357_v18, %v3549_v10 }
  0xf5   : > { %1494 = vmatprep.subr.bf16.mxu1 %v978_v44  ;;  %v975_v47 = vpack.c.bf16 %v871_v3, %v863_v48  ;;  %v880_v53 = vmax.f32 %v752_v41, 0.0  ;;  %v538_v46 = vmul.f32 %v3357_v18, %v3547_v9  ;;  %v527_v13 = vmul.f32 %v3359_v19, %v3549_v10  ;;  %1210 = vmatmul.mubr.bf16.gmra.mrb[12].mxu0 %v3782_v8 }
  0xf6   : > { %v977_v26 = vpack.c.bf16 %v873_v61, %v865_v58  ;;  %v888_v24 = vmax.f32 %v760_v63, 0.0  ;;  %v754_v27 = vadd.f32 %v3568_v38, %v530_v55  ;;  %v535_v23 = vmul.f32 %v3359_v19, %v3547_v9  ;;  %1323 = vmatmul.mubr.bf16.gmra.mrb[12].mxu1 %v3782_v8  ;;  %1219 = vmatprep.mubr.bf16.mxu0 %v4402_v5 }
  0xf7   : > { %1382 = vmatpush1.bf16.msra.mxu0 %v975_v47  ;;  %v762_v15 = vadd.f32 %v3566_v1, %v538_v46  ;;  %v751_v42 = vadd.f32 %v3568_v38, %v527_v13  ;;  %v529_v0 = vmul.f32 %v3361_v20, %v3549_v10  ;;  %v537_v28 = vmul.f32 %v3361_v20, %v3547_v9 }
  0xf8   : > { %1495 = vmatpush1.bf16.msra.mxu1 %v977_v26  ;;  %v984_v35 = vpack.c.bf16 %v888_v24, %v880_v53  ;;  %v882_v30 = vmax.f32 %v754_v27, 0.0  ;;  %v759_v16 = vadd.f32 %v3566_v1, %v535_v23  ;;  %v544_v49 = vmul.f32 %v3355_v17, %v3587_v22  ;;  %1332 = vmatprep.mubr.bf16.mxu1 %v4402_v5 }
  0xf9   : > { %v890_v50 = vmax.f32 %v762_v15, 0.0  ;;  %v879_v62 = vmax.f32 %v751_v42, 0.0  ;;  %v753_v45 = vadd.f32 %v3568_v38, %v529_v0  ;;  %v761_v32 = vadd.f32 %v3566_v1, %v537_v28  ;;  %v2966_v42 = vld [vmem:[%s4390_s3 + $0x28] sm:$0xff]  }
  0xfa   : > { %1383 = vmatprep.subr.bf16.mxu0 %v984_v35  ;;  %v887_v10 = vmax.f32 %v759_v16, 0.0  ;;  %v552_v9 = vmul.f32 %v3355_v17, %v3585_v21  ;;  %v768_v31 = vadd.f32 %v3605_v57, %v544_v49  ;;  %v546_v33 = vmul.f32 %v3357_v18, %v3587_v22 }
  0xfb   : > { %v986_v51 = vpack.c.bf16 %v890_v50, %v882_v30  ;;  %v881_v52 = vmax.f32 %v753_v45, 0.0  ;;  %v889_v38 = vmax.f32 %v761_v32, 0.0  ;;  %v554_v1 = vmul.f32 %v3357_v18, %v3585_v21 }
  0xfc   : > { %v983_v37 = vpack.c.bf16 %v887_v10, %v879_v62  ;;  %v776_v59 = vadd.f32 %v3603_v54, %v552_v9  ;;  %v896_v60 = vmax.f32 %v768_v31, 0.0  ;;  %v770_v4 = vadd.f32 %v3605_v57, %v546_v33 }
  0xfd   : > { %1496 = vmatprep.subr.bf16.mxu1 %v986_v51  ;;  %v985_v39 = vpack.c.bf16 %v889_v38, %v881_v52  ;;  %v778_v40 = vadd.f32 %v3603_v54, %v554_v1  ;;  %v543_v7 = vmul.f32 %v3359_v19, %v3587_v22  ;;  %v551_v12 = vmul.f32 %v3359_v19, %v3585_v21 }
  0xfe   : > { %1384 = vmatpush1.bf16.msra.mxu0 %v983_v37  ;;  %v904_v43 = vmax.f32 %v776_v59, 0.0  ;;  %v898_v11 = vmax.f32 %v770_v4, 0.0  ;;  %v545_v44 = vmul.f32 %v3361_v20, %v3587_v22  ;;  %v553_v48 = vmul.f32 %v3361_v20, %v3585_v21  ;;  %1333 = vmatmul.mubr.bf16.gmra.mrb[16].mxu1 %v3822_v34 }
  0xff   : > { %1497 = vmatpush1.bf16.msra.mxu1 %v985_v39  ;;  %v906_v3 = vmax.f32 %v778_v40, 0.0  ;;  %v767_v41 = vadd.f32 %v3605_v57, %v543_v7  ;;  %v775_v58 = vadd.f32 %v3603_v54, %v551_v12  ;;  %v560_v61 = vmul.f32 %v3355_v17, %v3622_v29  ;;  %1220 = vmatmul.mubr.bf16.gmra.mrb[16].mxu0 %v3822_v34 }
 0x100   : > { %v992_v63 = vpack.c.bf16 %v904_v43, %v896_v60  ;;  %v769_v55 = vadd.f32 %v3605_v57, %v545_v44  ;;  %v777_v22 = vadd.f32 %v3603_v54, %v553_v48  ;;  %v568_v21 = vmul.f32 %v3355_v17, %v3620_v56  ;;  %1229 = vmatprep.mubr.bf16.mxu0 %v4402_v5 }
 0x101   : > { %v994_v47 = vpack.c.bf16 %v906_v3, %v898_v11  ;;  %v895_v53 = vmax.f32 %v767_v41, 0.0  ;;  %v903_v46 = vmax.f32 %v775_v58, 0.0  ;;  %v784_v13 = vadd.f32 %v3641_v25, %v560_v61  ;;  %1342 = vmatprep.mubr.bf16.mxu1 %v4402_v5 }
 0x102   : > { %1385 = vmatprep.subr.bf16.mxu0 %v992_v63  ;;  %v897_v26 = vmax.f32 %v769_v55, 0.0  ;;  %v905_v24 = vmax.f32 %v777_v22, 0.0  ;;  %v792_v27 = vadd.f32 %v3639_v36, %v568_v21  ;;  %v562_v54 = vmul.f32 %v3357_v18, %v3622_v29 }
 0x103   : > { %1498 = vmatprep.subr.bf16.mxu1 %v994_v47  ;;  %v991_v57 = vpack.c.bf16 %v903_v46, %v895_v53  ;;  %v912_v17 = vmax.f32 %v784_v13, 0.0  ;;  %v570_v23 = vmul.f32 %v3357_v18, %v3620_v56  ;;  %v559_v15 = vmul.f32 %v3359_v19, %v3622_v29 }
 0x104   : > { %v993_v0 = vpack.c.bf16 %v905_v24, %v897_v26  ;;  %v920_v28 = vmax.f32 %v792_v27, 0.0  ;;  %v786_v35 = vadd.f32 %v3641_v25, %v562_v54  ;;  %v567_v30 = vmul.f32 %v3359_v19, %v3620_v56 }
 0x105   : > { %1386 = vmatpush1.bf16.msra.mxu0 %v991_v57  ;;  %v794_v16 = vadd.f32 %v3639_v36, %v570_v23  ;;  %v783_v49 = vadd.f32 %v3641_v25, %v559_v15  ;;  %v561_v18 = vmul.f32 %v3361_v20, %v3622_v29  ;;  %v569_v50 = vmul.f32 %v3361_v20, %v3620_v56 }
 0x106   : > { %1499 = vmatpush1.bf16.msra.mxu1 %v993_v0  ;;  %v1000_v62 = vpack.c.bf16 %v920_v28, %v912_v17  ;;  %v914_v45 = vmax.f32 %v786_v35, 0.0  ;;  %v791_v32 = vadd.f32 %v3639_v36, %v567_v30 }
 0x107   : > { %v922_v10 = vmax.f32 %v794_v16, 0.0  ;;  %v911_v9 = vmax.f32 %v783_v49, 0.0  ;;  %v785_v19 = vadd.f32 %v3641_v25, %v561_v18  ;;  %v793_v31 = vadd.f32 %v3639_v36, %v569_v50  ;;  %1230 = vmatmul.mubr.bf16.gmra.mrb[20].mxu0 %v2966_v42  ;;  %1343 = vmatmul.mubr.bf16.gmra.mrb[20].mxu1 %v2966_v42  ;;  %v2967_v25 = vld [vmem:[%s4390_s3 + $0x30] sm:$0xff]   ;;  %v2968_v36 = vld [vmem:[%s4390_s3 + $0x38] sm:$0xff]  }
 0x108   : > { %1387 = vmatprep.subr.bf16.mxu0 %v1000_v62  ;;  %v919_v33 = vmax.f32 %v791_v32, 0.0  ;;  %1239 = vmatprep.mubr.bf16.mxu0 %v4402_v5 }
 0x109   : > { %v1002_v29 = vpack.c.bf16 %v922_v10, %v914_v45  ;;  %v913_v51 = vmax.f32 %v785_v19, 0.0  ;;  %v921_v20 = vmax.f32 %v793_v31, 0.0  ;;  %1352 = vmatprep.mubr.bf16.mxu1 %v4402_v5 }
 0x10a   : > { %v999_v56 = vpack.c.bf16 %v919_v33, %v911_v9 }
 0x10b   : > { %1500 = vmatprep.subr.bf16.mxu1 %v1002_v29  ;;  %v1001_v52 = vpack.c.bf16 %v921_v20, %v913_v51 }
 0x10c   : > { %1388 = vmatpush1.bf16.msra.mxu0 %v999_v56 }
 0x10d   : > { %1501 = vmatpush1.bf16.msra.mxu1 %v1001_v52 }
 0x10f   : > { %1240 = vmatmul.mubr.bf16.gmra.mrb[24].mxu0 %v2967_v25  ;;  %1353 = vmatmul.mubr.bf16.gmra.mrb[24].mxu1 %v2967_v25 }
 0x110   : > { %1249 = vmatprep.mubr.bf16.mxu0 %v4402_v5  ;;  %1362 = vmatprep.mubr.bf16.mxu1 %v4402_v5 }
 0x117   : > { %1250 = vmatmul.mubr.bf16.gmra.mrb[28].mxu0 %v2968_v36  ;;  %1363 = vmatmul.mubr.bf16.gmra.mrb[28].mxu1 %v2968_v36 }
 0x118   : > { %1405 = vmatprep.mubr.bf16.mxu0 %v4402_v5  ;;  %1518 = vmatprep.mubr.bf16.mxu1 %v4402_v5 }
 0x11f   : > { %1406 = vmatmul.mubr.bf16.vlgmr.msra.gmra.mrb[32].mxu0 %v3664_v14  ;;  %1519 = vmatmul.mubr.bf16.vlgmr.msra.gmra.mrb[32].mxu1 %v3664_v14  ;;  %v3910_v14 = vpop.permute.xlu1 %1026 }
 0x120   : > { %1415 = vmatprep.mubr.bf16.mxu0 %v4402_v5  ;;  %1528 = vmatprep.mubr.bf16.mxu1 %v4402_v5 }
 0x123   : > { %v3922_v21 = vpop.permute.xlu1 %1036 }
 0x127   : > { %1416 = vmatmul.mubr.bf16.gmra.mrb[36].mxu0 %v3704_v6  ;;  %1529 = vmatmul.mubr.bf16.gmra.mrb[36].mxu1 %v3704_v6  ;;  %v3912_v6 = vpop.permute.xlu0 %1021  ;;  %v3934_v29 = vpop.permute.xlu1 %1046 }
 0x128   : > { %1425 = vmatprep.mubr.bf16.mxu0 %v4402_v5  ;;  %1538 = vmatprep.mubr.bf16.mxu1 %v4402_v5 }
 0x12b   : > { %v3924_v47 = vpop.permute.xlu0 %1031 }
 0x12f   : > { %1426 = vmatmul.mubr.bf16.gmra.mrb[40].mxu0 %v3746_v2  ;;  %1539 = vmatmul.mubr.bf16.gmra.mrb[40].mxu1 %v3746_v2  ;;  %v3936_v51 = vpop.permute.xlu0 %1041 }
 0x130   : > { %1435 = vmatprep.mubr.bf16.mxu0 %v4402_v5  ;;  %1548 = vmatprep.mubr.bf16.mxu1 %v4402_v5 }
 0x137   : > { %1436 = vmatmul.mubr.bf16.gmra.mrb[44].mxu0 %v3782_v8  ;;  %1549 = vmatmul.mubr.bf16.gmra.mrb[44].mxu1 %v3782_v8 }
 0x138   : > { %1445 = vmatprep.mubr.bf16.mxu0 %v4402_v5  ;;  %1558 = vmatprep.mubr.bf16.mxu1 %v4402_v5 }
 0x13f   : > { %1446 = vmatmul.mubr.bf16.gmra.mrb[48].mxu0 %v3822_v34  ;;  %1559 = vmatmul.mubr.bf16.gmra.mrb[48].mxu1 %v3822_v34 }
 0x140   : > { %1455 = vmatprep.mubr.bf16.mxu0 %v4402_v5  ;;  %1568 = vmatprep.mubr.bf16.mxu1 %v4402_v5 }
 0x147   : > { %1456 = vmatmul.mubr.bf16.gmra.mrb[52].mxu0 %v2966_v42  ;;  %1569 = vmatmul.mubr.bf16.gmra.mrb[52].mxu1 %v2966_v42 }
 0x148   : > { %1465 = vmatprep.mubr.bf16.mxu0 %v4402_v5  ;;  %1578 = vmatprep.mubr.bf16.mxu1 %v4402_v5 }
 0x14f   : > { %1466 = vmatmul.mubr.bf16.gmra.mrb[56].mxu0 %v2967_v25  ;;  %1579 = vmatmul.mubr.bf16.gmra.mrb[56].mxu1 %v2967_v25 }
 0x150   : > { %1475 = vmatprep.mubr.bf16.mxu0 %v4402_v5  ;;  %1588 = vmatprep.mubr.bf16.mxu1 %v4402_v5 }
 0x157   : > { %1476 = vmatmul.mubr.bf16.gmra.mrb[60].mxu0 %v2968_v36  ;;  %1589 = vmatmul.mubr.bf16.gmra.mrb[60].mxu1 %v2968_v36 }
 0x158   : > { %1983 = vmatprep.mubr.bf16.mxu0 %v4402_v5  ;;  %2096 = vmatprep.mubr.bf16.mxu1 %v4402_v5 }
 0x1b0   : > { %v1181_v2 = vpop.f32.mrb[0].mxu0  ;;  %v1294_v8 = vpop.f32.mrb[0].mxu1 }
 0x1b1   : > { %v1182_v34 = vadd.f32 %v1181_v2, %v3912_v6  ;;  %v1295_v38 = vadd.f32 %v1294_v8, %v3912_v6  ;;  %v1183_v1 = vpop.f32.mrb[1].mxu0  ;;  %v1296_v37 = vpop.f32.mrb[1].mxu1 }
 0x1b2   : > { %v1184_v59 = vadd.f32 %v1183_v1, %v3912_v6  ;;  %v1297_v60 = vadd.f32 %v1296_v37, %v3912_v6  ;;  %v1185_v4 = vpop.f32.mrb[2].mxu0  ;;  %v1298_v39 = vpop.f32.mrb[2].mxu1 }
 0x1b3   : > { %v1186_v40 = vadd.f32 %v1185_v4, %v3910_v14  ;;  %v1299_v7 = vadd.f32 %v1298_v39, %v3910_v14  ;;  %v1187_v12 = vpop.f32.mrb[3].mxu0  ;;  %v1300_v43 = vpop.f32.mrb[3].mxu1  ;;  %v1599_v48 = vmax.f32 %v1182_v34, 0.0  ;;  %v1601_v3 = vmax.f32 %v1295_v38, 0.0 }
 0x1b4   : > { %v1188_v11 = vadd.f32 %v1187_v12, %v3910_v14  ;;  %v1301_v44 = vadd.f32 %v1300_v43, %v3910_v14  ;;  %v1600_v61 = vmax.f32 %v1184_v59, 0.0  ;;  %v1602_v63 = vmax.f32 %v1297_v60, 0.0 }
 0x1b5   : > { %v1607_v41 = vmax.f32 %v1186_v40, 0.0  ;;  %v1609_v58 = vmax.f32 %v1299_v7, 0.0 }
 0x1b6   : > { %v1608_v55 = vmax.f32 %v1188_v11, 0.0  ;;  %v1610_v22 = vmax.f32 %v1301_v44, 0.0 }
 0x1b7   : > { %v1743_v53 = vpack.c.bf16 %v1607_v41, %v1599_v48  ;;  %v1745_v46 = vpack.c.bf16 %v1609_v58, %v1601_v3 }
 0x1b8   : > { %v1744_v13 = vpack.c.bf16 %v1608_v55, %v1600_v61  ;;  %v1746_v26 = vpack.c.bf16 %v1610_v22, %v1602_v63  ;;  %v1191_v24 = vpop.f32.mrb[4].mxu0  ;;  %v1304_v27 = vpop.f32.mrb[4].mxu1 }
 0x1b9   : > { %v1192_v54 = vadd.f32 %v1191_v24, %v3924_v47  ;;  %v1305_v57 = vadd.f32 %v1304_v27, %v3924_v47  ;;  %v1193_v17 = vpop.f32.mrb[5].mxu0  ;;  %v1306_v23 = vpop.f32.mrb[5].mxu1 }
 0x1ba   : > { %v1194_v15 = vadd.f32 %v1193_v17, %v3924_v47  ;;  %v1307_v42 = vadd.f32 %v1306_v23, %v3924_v47  ;;  %v1195_v0 = vpop.f32.mrb[6].mxu0  ;;  %v1308_v28 = vpop.f32.mrb[6].mxu1  ;;  %1951 = vmatprep.subr.bf16.mxu0 %v1744_v13  ;;  %2064 = vmatprep.subr.bf16.mxu1 %v1746_v26 }
 0x1bb   : > { %v1196_v35 = vadd.f32 %v1195_v0, %v3922_v21  ;;  %v1309_v30 = vadd.f32 %v1308_v28, %v3922_v21  ;;  %v1197_v16 = vpop.f32.mrb[7].mxu0  ;;  %v1310_v49 = vpop.f32.mrb[7].mxu1  ;;  %1952 = vmatpush1.bf16.msra.mxu0 %v1743_v53  ;;  %2065 = vmatpush1.bf16.msra.mxu1 %v1745_v46  ;;  %v1615_v62 = vmax.f32 %v1192_v54, 0.0  ;;  %v1617_v45 = vmax.f32 %v1305_v57, 0.0 }
 0x1bc   : > { %v1198_v18 = vadd.f32 %v1197_v16, %v3922_v21  ;;  %v1311_v50 = vadd.f32 %v1310_v49, %v3922_v21  ;;  %v1616_v9 = vmax.f32 %v1194_v15, 0.0  ;;  %v1618_v19 = vmax.f32 %v1307_v42, 0.0  ;;  %v3946_v22 = vpop.permute.xlu1 %1056  ;;  %v3948_v13 = vpop.permute.xlu0 %1051 }
 0x1bd   : > { %v1623_v32 = vmax.f32 %v1196_v35, 0.0  ;;  %v1625_v10 = vmax.f32 %v1309_v30, 0.0 }
 0x1be   : > { %v1624_v31 = vmax.f32 %v1198_v18, 0.0  ;;  %v1626_v33 = vmax.f32 %v1311_v50, 0.0 }
 0x1bf   : > { %v1751_v20 = vpack.c.bf16 %v1623_v32, %v1615_v62  ;;  %v1753_v56 = vpack.c.bf16 %v1625_v10, %v1617_v45 }
 0x1c0   : > { %v1752_v52 = vpack.c.bf16 %v1624_v31, %v1616_v9  ;;  %v1754_v25 = vpack.c.bf16 %v1626_v33, %v1618_v19  ;;  %v1201_v36 = vpop.f32.mrb[8].mxu0  ;;  %v1314_v2 = vpop.f32.mrb[8].mxu1 }
 0x1c1   : > { %v1202_v8 = vadd.f32 %v1201_v36, %v3936_v51  ;;  %v1315_v34 = vadd.f32 %v1314_v2, %v3936_v51  ;;  %v1203_v38 = vpop.f32.mrb[9].mxu0  ;;  %v1316_v1 = vpop.f32.mrb[9].mxu1 }
 0x1c2   : > { %v1204_v37 = vadd.f32 %v1203_v38, %v3936_v51  ;;  %v1317_v59 = vadd.f32 %v1316_v1, %v3936_v51  ;;  %v1205_v60 = vpop.f32.mrb[10].mxu0  ;;  %v1318_v4 = vpop.f32.mrb[10].mxu1  ;;  %1953 = vmatprep.subr.bf16.mxu0 %v1752_v52  ;;  %2066 = vmatprep.subr.bf16.mxu1 %v1754_v25 }
 0x1c3   : > { %v1206_v39 = vadd.f32 %v1205_v60, %v3934_v29  ;;  %v1319_v40 = vadd.f32 %v1318_v4, %v3934_v29  ;;  %v1207_v7 = vpop.f32.mrb[11].mxu0  ;;  %v1320_v12 = vpop.f32.mrb[11].mxu1  ;;  %1954 = vmatpush1.bf16.msra.mxu0 %v1751_v20  ;;  %2067 = vmatpush1.bf16.msra.mxu1 %v1753_v56  ;;  %v1631_v44 = vmax.f32 %v1202_v8, 0.0  ;;  %v1633_v48 = vmax.f32 %v1315_v34, 0.0 }
 0x1c4   : > { %v1208_v43 = vadd.f32 %v1207_v7, %v3934_v29  ;;  %v1321_v11 = vadd.f32 %v1320_v12, %v3934_v29  ;;  %v1632_v58 = vmax.f32 %v1204_v37, 0.0  ;;  %v1634_v61 = vmax.f32 %v1317_v59, 0.0  ;;  %v3958_v52 = vpop.permute.xlu1 %1066  ;;  %v3960_v2 = vpop.permute.xlu0 %1061 }
 0x1c5   : > { %v1639_v3 = vmax.f32 %v1206_v39, 0.0  ;;  %v1641_v41 = vmax.f32 %v1319_v40, 0.0 }
 0x1c6   : > { %v1640_v63 = vmax.f32 %v1208_v43, 0.0  ;;  %v1642_v55 = vmax.f32 %v1321_v11, 0.0 }
 0x1c7   : > { %v1759_v53 = vpack.c.bf16 %v1639_v3, %v1631_v44  ;;  %v1761_v46 = vpack.c.bf16 %v1641_v41, %v1633_v48 }
 0x1c8   : > { %v1760_v26 = vpack.c.bf16 %v1640_v63, %v1632_v58  ;;  %v1762_v24 = vpack.c.bf16 %v1642_v55, %v1634_v61  ;;  %v1211_v27 = vpop.f32.mrb[12].mxu0 }
 0x1c9   : > { %v1212_v54 = vadd.f32 %v1211_v27, %v3948_v13  ;;  %v1324_v57 = vpop.f32.mrb[12].mxu1  ;;  %v1213_v17 = vpop.f32.mrb[13].mxu0 }
 0x1ca   : > { %v1325_v23 = vadd.f32 %v1324_v57, %v3948_v13  ;;  %v1214_v15 = vadd.f32 %v1213_v17, %v3948_v13  ;;  %v1326_v42 = vpop.f32.mrb[13].mxu1  ;;  %v1215_v0 = vpop.f32.mrb[14].mxu0  ;;  %1955 = vmatprep.subr.bf16.mxu0 %v1760_v26  ;;  %2068 = vmatprep.subr.bf16.mxu1 %v1762_v24 }
 0x1cb   : > { %v1327_v28 = vadd.f32 %v1326_v42, %v3948_v13  ;;  %v1216_v35 = vadd.f32 %v1215_v0, %v3946_v22  ;;  %v1328_v30 = vpop.f32.mrb[14].mxu1  ;;  %v1217_v16 = vpop.f32.mrb[15].mxu0  ;;  %1956 = vmatpush1.bf16.msra.mxu0 %v1759_v53  ;;  %2069 = vmatpush1.bf16.msra.mxu1 %v1761_v46  ;;  %v1647_v62 = vmax.f32 %v1212_v54, 0.0 }
 0x1cc   : > { %v1329_v49 = vadd.f32 %v1328_v30, %v3946_v22  ;;  %v1218_v18 = vadd.f32 %v1217_v16, %v3946_v22  ;;  %v1330_v50 = vpop.f32.mrb[15].mxu1  ;;  %v1649_v10 = vmax.f32 %v1325_v23, 0.0  ;;  %v1648_v9 = vmax.f32 %v1214_v15, 0.0  ;;  %v3970_v27 = vpop.permute.xlu1 %1076 }
 0x1cd   : > { %v1655_v45 = vmax.f32 %v1216_v35, 0.0  ;;  %v1331_v32 = vadd.f32 %v1330_v50, %v3946_v22  ;;  %v1650_v33 = vmax.f32 %v1327_v28, 0.0  ;;  %v3972_v54 = vpop.permute.xlu0 %1071 }
 0x1ce   : > { %v1657_v19 = vmax.f32 %v1329_v49, 0.0  ;;  %v1656_v31 = vmax.f32 %v1218_v18, 0.0 }
 0x1cf   : > { %v1767_v20 = vpack.c.bf16 %v1655_v45, %v1647_v62  ;;  %v1658_v56 = vmax.f32 %v1331_v32, 0.0 }
 0x1d0   : > { %v1769_v25 = vpack.c.bf16 %v1657_v19, %v1649_v10  ;;  %v1768_v36 = vpack.c.bf16 %v1656_v31, %v1648_v9 }
 0x1d1   : > { %v1770_v8 = vpack.c.bf16 %v1658_v56, %v1650_v33  ;;  %v1334_v34 = vpop.f32.mrb[16].mxu1 }
 0x1d2   : > { %v1221_v38 = vpop.f32.mrb[16].mxu0  ;;  %v1335_v1 = vadd.f32 %v1334_v34, %v3960_v2  ;;  %v1336_v37 = vpop.f32.mrb[17].mxu1  ;;  %1957 = vmatprep.subr.bf16.mxu0 %v1768_v36 }
 0x1d3   : > { %v1222_v59 = vadd.f32 %v1221_v38, %v3960_v2  ;;  %v1223_v60 = vpop.f32.mrb[17].mxu0  ;;  %v1337_v4 = vadd.f32 %v1336_v37, %v3960_v2  ;;  %v1338_v39 = vpop.f32.mrb[18].mxu1  ;;  %2070 = vmatprep.subr.bf16.mxu1 %v1770_v8  ;;  %1958 = vmatpush1.bf16.msra.mxu0 %v1767_v20 }
 0x1d4   : > { %v1224_v40 = vadd.f32 %v1223_v60, %v3960_v2  ;;  %v1225_v7 = vpop.f32.mrb[18].mxu0  ;;  %v1339_v12 = vadd.f32 %v1338_v39, %v3958_v52  ;;  %v1340_v43 = vpop.f32.mrb[19].mxu1  ;;  %2071 = vmatpush1.bf16.msra.mxu1 %v1769_v25  ;;  %v1665_v3 = vmax.f32 %v1335_v1, 0.0 }
 0x1d5   : > { %v1226_v11 = vadd.f32 %v1225_v7, %v3958_v52  ;;  %v1227_v44 = vpop.f32.mrb[19].mxu0  ;;  %v1341_v48 = vadd.f32 %v1340_v43, %v3958_v52  ;;  %v1663_v61 = vmax.f32 %v1222_v59, 0.0  ;;  %v1666_v63 = vmax.f32 %v1337_v4, 0.0  ;;  %v3982_v38 = vpop.permute.xlu1 %1086 }
 0x1d6   : > { %v1673_v41 = vmax.f32 %v1339_v12, 0.0  ;;  %v1228_v58 = vadd.f32 %v1227_v44, %v3958_v52  ;;  %v1664_v46 = vmax.f32 %v1224_v40, 0.0  ;;  %v3984_v1 = vpop.permute.xlu0 %1081 }
 0x1d7   : > { %v1671_v55 = vmax.f32 %v1226_v11, 0.0  ;;  %v1674_v53 = vmax.f32 %v1341_v48, 0.0 }
 0x1d8   : > { %v1777_v26 = vpack.c.bf16 %v1673_v41, %v1665_v3  ;;  %v1672_v24 = vmax.f32 %v1228_v58, 0.0 }
 0x1d9   : > { %v1775_v57 = vpack.c.bf16 %v1671_v55, %v1663_v61  ;;  %v1778_v17 = vpack.c.bf16 %v1674_v53, %v1666_v63 }
 0x1da   : > { %v1776_v23 = vpack.c.bf16 %v1672_v24, %v1664_v46  ;;  %v1231_v15 = vpop.f32.mrb[20].mxu0  ;;  %v1344_v42 = vpop.f32.mrb[20].mxu1 }
 0x1db   : > { %v1232_v0 = vadd.f32 %v1231_v15, %v3972_v54  ;;  %v1345_v28 = vadd.f32 %v1344_v42, %v3972_v54  ;;  %v1233_v35 = vpop.f32.mrb[21].mxu0  ;;  %v1346_v30 = vpop.f32.mrb[21].mxu1  ;;  %2072 = vmatprep.subr.bf16.mxu1 %v1778_v17 }
 0x1dc   : > { %v1234_v16 = vadd.f32 %v1233_v35, %v3972_v54  ;;  %v1347_v49 = vadd.f32 %v1346_v30, %v3972_v54  ;;  %v1235_v18 = vpop.f32.mrb[22].mxu0  ;;  %v1348_v50 = vpop.f32.mrb[22].mxu1  ;;  %1959 = vmatprep.subr.bf16.mxu0 %v1776_v23  ;;  %2073 = vmatpush1.bf16.msra.mxu1 %v1777_v26 }
 0x1dd   : > { %v1236_v62 = vadd.f32 %v1235_v18, %v3970_v27  ;;  %v1349_v45 = vadd.f32 %v1348_v50, %v3970_v27  ;;  %v1237_v32 = vpop.f32.mrb[23].mxu0  ;;  %v1350_v10 = vpop.f32.mrb[23].mxu1  ;;  %1960 = vmatpush1.bf16.msra.mxu0 %v1775_v57  ;;  %v1679_v31 = vmax.f32 %v1232_v0, 0.0  ;;  %v1681_v33 = vmax.f32 %v1345_v28, 0.0 }
 0x1de   : > { %v1238_v9 = vadd.f32 %v1237_v32, %v3970_v27  ;;  %v1351_v19 = vadd.f32 %v1350_v10, %v3970_v27  ;;  %v1680_v25 = vmax.f32 %v1234_v16, 0.0  ;;  %v1682_v36 = vmax.f32 %v1347_v49, 0.0  ;;  %v3994_v28 = vpop.permute.xlu1 %1096  ;;  %v3996_v35 = vpop.permute.xlu0 %1091 }
 0x1df   : > { %v1687_v20 = vmax.f32 %v1236_v62, 0.0  ;;  %v1689_v56 = vmax.f32 %v1349_v45, 0.0 }
 0x1e0   : > { %v1688_v8 = vmax.f32 %v1238_v9, 0.0  ;;  %v1690_v34 = vmax.f32 %v1351_v19, 0.0 }
 0x1e1   : > { %v1783_v37 = vpack.c.bf16 %v1687_v20, %v1679_v31  ;;  %v1785_v59 = vpack.c.bf16 %v1689_v56, %v1681_v33 }
 0x1e2   : > { %v1784_v60 = vpack.c.bf16 %v1688_v8, %v1680_v25  ;;  %v1786_v4 = vpack.c.bf16 %v1690_v34, %v1682_v36  ;;  %v1241_v39 = vpop.f32.mrb[24].mxu0  ;;  %v1354_v40 = vpop.f32.mrb[24].mxu1 }
 0x1e3   : > { %v1242_v7 = vadd.f32 %v1241_v39, %v3984_v1  ;;  %v1355_v12 = vadd.f32 %v1354_v40, %v3984_v1  ;;  %v1243_v43 = vpop.f32.mrb[25].mxu0  ;;  %v1356_v11 = vpop.f32.mrb[25].mxu1 }
 0x1e4   : > { %v1244_v44 = vadd.f32 %v1243_v43, %v3984_v1  ;;  %v1357_v48 = vadd.f32 %v1356_v11, %v3984_v1  ;;  %v1245_v3 = vpop.f32.mrb[26].mxu0  ;;  %v1358_v41 = vpop.f32.mrb[26].mxu1  ;;  %1961 = vmatprep.subr.bf16.mxu0 %v1784_v60  ;;  %2074 = vmatprep.subr.bf16.mxu1 %v1786_v4 }
 0x1e5   : > { %v1246_v58 = vadd.f32 %v1245_v3, %v3982_v38  ;;  %v1359_v61 = vadd.f32 %v1358_v41, %v3982_v38  ;;  %v1247_v63 = vpop.f32.mrb[27].mxu0  ;;  %v1360_v55 = vpop.f32.mrb[27].mxu1  ;;  %1962 = vmatpush1.bf16.msra.mxu0 %v1783_v37  ;;  %2075 = vmatpush1.bf16.msra.mxu1 %v1785_v59  ;;  %v1695_v26 = vmax.f32 %v1242_v7, 0.0  ;;  %v1697_v24 = vmax.f32 %v1355_v12, 0.0 }
 0x1e6   : > { %v1248_v53 = vadd.f32 %v1247_v63, %v3982_v38  ;;  %v1361_v46 = vadd.f32 %v1360_v55, %v3982_v38  ;;  %v1696_v23 = vmax.f32 %v1244_v44, 0.0  ;;  %v1698_v15 = vmax.f32 %v1357_v48, 0.0 }
 0x1e7   : > { %v1703_v57 = vmax.f32 %v1246_v58, 0.0  ;;  %v1705_v17 = vmax.f32 %v1359_v61, 0.0 }
 0x1e8   : > { %v1704_v42 = vmax.f32 %v1248_v53, 0.0  ;;  %v1706_v0 = vmax.f32 %v1361_v46, 0.0 }
 0x1e9   : > { %v1791_v30 = vpack.c.bf16 %v1703_v57, %v1695_v26  ;;  %v1793_v16 = vpack.c.bf16 %v1705_v17, %v1697_v24  ;;  %v4013_v17 = vld [vmem:[%s4392_s5] sm:$0xff]  }
 0x1ea   : > { %v1792_v49 = vpack.c.bf16 %v1704_v42, %v1696_v23  ;;  %v1794_v18 = vpack.c.bf16 %v1706_v0, %v1698_v15  ;;  %v1251_v50 = vpop.f32.mrb[28].mxu0  ;;  %v1364_v62 = vpop.f32.mrb[28].mxu1 }
 0x1eb   : > { %v1252_v45 = vadd.f32 %v1251_v50, %v3996_v35  ;;  %v1365_v32 = vadd.f32 %v1364_v62, %v3996_v35  ;;  %v1253_v10 = vpop.f32.mrb[29].mxu0  ;;  %v1366_v9 = vpop.f32.mrb[29].mxu1 }
 0x1ec   : > { %v1254_v19 = vadd.f32 %v1253_v10, %v3996_v35  ;;  %v1367_v31 = vadd.f32 %v1366_v9, %v3996_v35  ;;  %v1255_v33 = vpop.f32.mrb[30].mxu0  ;;  %v1368_v20 = vpop.f32.mrb[30].mxu1  ;;  %1963 = vmatprep.subr.bf16.mxu0 %v1792_v49  ;;  %2076 = vmatprep.subr.bf16.mxu1 %v1794_v18 }
 0x1ed   : > { %v1256_v56 = vadd.f32 %v1255_v33, %v3994_v28  ;;  %v1369_v25 = vadd.f32 %v1368_v20, %v3994_v28  ;;  %v1257_v36 = vpop.f32.mrb[31].mxu0  ;;  %v1370_v8 = vpop.f32.mrb[31].mxu1  ;;  %1964 = vmatpush1.bf16.msra.mxu0 %v1791_v30  ;;  %2077 = vmatpush1.bf16.msra.mxu1 %v1793_v16  ;;  %v1711_v59 = vmax.f32 %v1252_v45, 0.0  ;;  %v1713_v60 = vmax.f32 %v1365_v32, 0.0 }
 0x1ee   : > { %v1258_v34 = vadd.f32 %v1257_v36, %v3994_v28  ;;  %v1371_v37 = vadd.f32 %v1370_v8, %v3994_v28  ;;  %v1712_v40 = vmax.f32 %v1254_v19, 0.0  ;;  %v1714_v7 = vmax.f32 %v1367_v31, 0.0 }
 0x1ef   : > { %v1719_v4 = vmax.f32 %v1256_v56, 0.0  ;;  %v1721_v39 = vmax.f32 %v1369_v25, 0.0 }
 0x1f0   : > { %v1720_v12 = vmax.f32 %v1258_v34, 0.0  ;;  %v1722_v43 = vmax.f32 %v1371_v37, 0.0 }
 0x1f1   : > { %v1799_v11 = vpack.c.bf16 %v1719_v4, %v1711_v59  ;;  %v1801_v44 = vpack.c.bf16 %v1721_v39, %v1713_v60  ;;  %v4030_v4 = vld [vmem:[%s4392_s5 + $0x8] sm:$0xff]  }
 0x1f2   : > { %v1800_v48 = vpack.c.bf16 %v1720_v12, %v1712_v40  ;;  %v1802_v3 = vpack.c.bf16 %v1722_v43, %v1714_v7  ;;  %v1407_v41 = vpop.f32.mrb[32].mxu0  ;;  %v1520_v58 = vpop.f32.mrb[32].mxu1 }
 0x1f3   : > { %v1408_v61 = vadd.f32 %v1407_v41, %v3912_v6  ;;  %v1521_v63 = vadd.f32 %v1520_v58, %v3912_v6  ;;  %v1409_v55 = vpop.f32.mrb[33].mxu0  ;;  %v1522_v53 = vpop.f32.mrb[33].mxu1 }
 0x1f4   : > { %v1410_v46 = vadd.f32 %v1409_v55, %v3912_v6  ;;  %v1523_v26 = vadd.f32 %v1522_v53, %v3912_v6  ;;  %v1411_v24 = vpop.f32.mrb[34].mxu0  ;;  %v1524_v57 = vpop.f32.mrb[34].mxu1  ;;  %1965 = vmatprep.subr.bf16.mxu0 %v1800_v48  ;;  %2078 = vmatprep.subr.bf16.mxu1 %v1802_v3 }
 0x1f5   : > { %v1412_v23 = vadd.f32 %v1411_v24, %v3910_v14  ;;  %v1525_v15 = vadd.f32 %v1524_v57, %v3910_v14  ;;  %v1413_v42 = vpop.f32.mrb[35].mxu0  ;;  %v1526_v0 = vpop.f32.mrb[35].mxu1  ;;  %1966 = vmatpush1.bf16.msra.mxu0 %v1799_v11  ;;  %2079 = vmatpush1.bf16.msra.mxu1 %v1801_v44  ;;  %v1603_v16 = vmax.f32 %v1408_v61, 0.0  ;;  %v1605_v49 = vmax.f32 %v1521_v63, 0.0 }
 0x1f6   : > { %v1414_v30 = vadd.f32 %v1413_v42, %v3910_v14  ;;  %v1527_v6 = vadd.f32 %v1526_v0, %v3910_v14  ;;  %v1604_v62 = vmax.f32 %v1410_v46, 0.0  ;;  %v1606_v45 = vmax.f32 %v1523_v26, 0.0 }
 0x1f7   : > { %v1611_v18 = vmax.f32 %v1412_v23, 0.0  ;;  %v1613_v50 = vmax.f32 %v1525_v15, 0.0 }
 0x1f8   : > { %v1612_v32 = vmax.f32 %v1414_v30, 0.0  ;;  %v1614_v10 = vmax.f32 %v1527_v6, 0.0  ;;  %1984 = vmatmul.mubr.bf16.vlgmr.msra.gmra.mrb[64].mxu0 %v4013_v17  ;;  %2097 = vmatmul.mubr.bf16.vlgmr.msra.gmra.mrb[64].mxu1 %v4013_v17 }
 0x1f9   : > { %v1747_v9 = vpack.c.bf16 %v1611_v18, %v1603_v16  ;;  %v1749_v19 = vpack.c.bf16 %v1613_v50, %v1605_v49  ;;  %1993 = vmatprep.mubr.bf16.mxu0 %v4402_v5  ;;  %2106 = vmatprep.mubr.bf16.mxu1 %v4402_v5  ;;  %v4047_v49 = vld [vmem:[%s4392_s5 + $0x10] sm:$0xff]  }
 0x1fa   : > { %v1748_v31 = vpack.c.bf16 %v1612_v32, %v1604_v62  ;;  %v1750_v14 = vpack.c.bf16 %v1614_v10, %v1606_v45  ;;  %v1417_v33 = vpop.f32.mrb[36].mxu0  ;;  %v1530_v20 = vpop.f32.mrb[36].mxu1 }
 0x1fb   : > { %v1418_v56 = vadd.f32 %v1417_v33, %v3924_v47  ;;  %v1531_v25 = vadd.f32 %v1530_v20, %v3924_v47  ;;  %v1419_v36 = vpop.f32.mrb[37].mxu0  ;;  %v1532_v8 = vpop.f32.mrb[37].mxu1 }
 0x1fc   : > { %v1420_v34 = vadd.f32 %v1419_v36, %v3924_v47  ;;  %v1533_v37 = vadd.f32 %v1532_v8, %v3924_v47  ;;  %v1421_v59 = vpop.f32.mrb[38].mxu0  ;;  %v1534_v60 = vpop.f32.mrb[38].mxu1  ;;  %2177 = vmatprep.subr.bf16.mxu0 %v1748_v31  ;;  %2290 = vmatprep.subr.bf16.mxu1 %v1750_v14 }
 0x1fd   : > { %v1422_v39 = vadd.f32 %v1421_v59, %v3922_v21  ;;  %v1535_v40 = vadd.f32 %v1534_v60, %v3922_v21  ;;  %v1423_v7 = vpop.f32.mrb[39].mxu0  ;;  %v1536_v12 = vpop.f32.mrb[39].mxu1  ;;  %2178 = vmatpush1.bf16.msra.mxu0 %v1747_v9  ;;  %2291 = vmatpush1.bf16.msra.mxu1 %v1749_v19  ;;  %v1619_v11 = vmax.f32 %v1418_v56, 0.0  ;;  %v1621_v44 = vmax.f32 %v1531_v25, 0.0 }
 0x1fe   : > { %v1424_v43 = vadd.f32 %v1423_v7, %v3922_v21  ;;  %v1537_v47 = vadd.f32 %v1536_v12, %v3922_v21  ;;  %v1620_v41 = vmax.f32 %v1420_v34, 0.0  ;;  %v1622_v58 = vmax.f32 %v1533_v37, 0.0 }
 0x1ff   : > { %v1627_v48 = vmax.f32 %v1422_v39, 0.0  ;;  %v1629_v3 = vmax.f32 %v1535_v40, 0.0 }
 0x200   : > { %v1628_v61 = vmax.f32 %v1424_v43, 0.0  ;;  %v1630_v63 = vmax.f32 %v1537_v47, 0.0  ;;  %1994 = vmatmul.mubr.bf16.gmra.mrb[68].mxu0 %v4030_v4  ;;  %2107 = vmatmul.mubr.bf16.gmra.mrb[68].mxu1 %v4030_v4 }
 0x201   : > { %v1755_v55 = vpack.c.bf16 %v1627_v48, %v1619_v11  ;;  %v1757_v53 = vpack.c.bf16 %v1629_v3, %v1621_v44  ;;  %2003 = vmatprep.mubr.bf16.mxu0 %v4402_v5  ;;  %2116 = vmatprep.mubr.bf16.mxu1 %v4402_v5  ;;  %v4064_v11 = vld [vmem:[%s4392_s5 + $0x18] sm:$0xff]  }
 0x202   : > { %v1756_v46 = vpack.c.bf16 %v1628_v61, %v1620_v41  ;;  %v1758_v21 = vpack.c.bf16 %v1630_v63, %v1622_v58  ;;  %v1427_v26 = vpop.f32.mrb[40].mxu0  ;;  %v1540_v24 = vpop.f32.mrb[40].mxu1 }
 0x203   : > { %v1428_v57 = vadd.f32 %v1427_v26, %v3936_v51  ;;  %v1541_v23 = vadd.f32 %v1540_v24, %v3936_v51  ;;  %v1429_v15 = vpop.f32.mrb[41].mxu0  ;;  %v1542_v42 = vpop.f32.mrb[41].mxu1 }
 0x204   : > { %v1430_v0 = vadd.f32 %v1429_v15, %v3936_v51  ;;  %v1543_v30 = vadd.f32 %v1542_v42, %v3936_v51  ;;  %v1431_v6 = vpop.f32.mrb[42].mxu0  ;;  %v1544_v16 = vpop.f32.mrb[42].mxu1  ;;  %2179 = vmatprep.subr.bf16.mxu0 %v1756_v46  ;;  %2292 = vmatprep.subr.bf16.mxu1 %v1758_v21 }
 0x205   : > { %v1432_v18 = vadd.f32 %v1431_v6, %v3934_v29  ;;  %v1545_v50 = vadd.f32 %v1544_v16, %v3934_v29  ;;  %v1433_v62 = vpop.f32.mrb[43].mxu0  ;;  %v1546_v45 = vpop.f32.mrb[43].mxu1  ;;  %2180 = vmatpush1.bf16.msra.mxu0 %v1755_v55  ;;  %2293 = vmatpush1.bf16.msra.mxu1 %v1757_v53  ;;  %v1635_v10 = vmax.f32 %v1428_v57, 0.0  ;;  %v1637_v9 = vmax.f32 %v1541_v23, 0.0 }
 0x206   : > { %v1434_v32 = vadd.f32 %v1433_v62, %v3934_v29  ;;  %v1547_v51 = vadd.f32 %v1546_v45, %v3934_v29  ;;  %v1636_v14 = vmax.f32 %v1430_v0, 0.0  ;;  %v1638_v33 = vmax.f32 %v1543_v30, 0.0 }
 0x207   : > { %v1643_v19 = vmax.f32 %v1432_v18, 0.0  ;;  %v1645_v31 = vmax.f32 %v1545_v50, 0.0 }
 0x208   : > { %v1644_v20 = vmax.f32 %v1434_v32, 0.0  ;;  %v1646_v56 = vmax.f32 %v1547_v51, 0.0  ;;  %2004 = vmatmul.mubr.bf16.gmra.mrb[72].mxu0 %v4047_v49  ;;  %2117 = vmatmul.mubr.bf16.gmra.mrb[72].mxu1 %v4047_v49  ;;  %v4081_v51 = vld [vmem:[%s4392_s5 + $0x20] sm:$0xff]  }
 0x209   : > { %v1763_v25 = vpack.c.bf16 %v1643_v19, %v1635_v10  ;;  %v1765_v36 = vpack.c.bf16 %v1645_v31, %v1637_v9  ;;  %2013 = vmatprep.mubr.bf16.mxu0 %v4402_v5  ;;  %2126 = vmatprep.mubr.bf16.mxu1 %v4402_v5 }
 0x20a   : > { %v1764_v8 = vpack.c.bf16 %v1644_v20, %v1636_v14  ;;  %v1766_v29 = vpack.c.bf16 %v1646_v56, %v1638_v33  ;;  %v1437_v34 = vpop.f32.mrb[44].mxu0  ;;  %v1550_v37 = vpop.f32.mrb[44].mxu1 }
 0x20b   : > { %v1438_v59 = vadd.f32 %v1437_v34, %v3948_v13  ;;  %v1551_v60 = vadd.f32 %v1550_v37, %v3948_v13  ;;  %v1439_v39 = vpop.f32.mrb[45].mxu0  ;;  %v1552_v40 = vpop.f32.mrb[45].mxu1 }
 0x20c   : > { %v1440_v7 = vadd.f32 %v1439_v39, %v3948_v13  ;;  %v1553_v12 = vadd.f32 %v1552_v40, %v3948_v13  ;;  %v1441_v43 = vpop.f32.mrb[46].mxu0  ;;  %v1554_v47 = vpop.f32.mrb[46].mxu1  ;;  %2181 = vmatprep.subr.bf16.mxu0 %v1764_v8  ;;  %2294 = vmatprep.subr.bf16.mxu1 %v1766_v29 }
 0x20d   : > { %v1442_v44 = vadd.f32 %v1441_v43, %v3946_v22  ;;  %v1555_v48 = vadd.f32 %v1554_v47, %v3946_v22  ;;  %v1443_v3 = vpop.f32.mrb[47].mxu0  ;;  %v1556_v41 = vpop.f32.mrb[47].mxu1  ;;  %2182 = vmatpush1.bf16.msra.mxu0 %v1763_v25  ;;  %2295 = vmatpush1.bf16.msra.mxu1 %v1765_v36  ;;  %v1651_v61 = vmax.f32 %v1438_v59, 0.0  ;;  %v1653_v63 = vmax.f32 %v1551_v60, 0.0 }
 0x20e   : > { %v1444_v58 = vadd.f32 %v1443_v3, %v3946_v22  ;;  %v1557_v13 = vadd.f32 %v1556_v41, %v3946_v22  ;;  %v1652_v46 = vmax.f32 %v1440_v7, 0.0  ;;  %v1654_v21 = vmax.f32 %v1553_v12, 0.0 }
 0x20f   : > { %v1659_v55 = vmax.f32 %v1442_v44, 0.0  ;;  %v1661_v53 = vmax.f32 %v1555_v48, 0.0 }
 0x210   : > { %v1660_v26 = vmax.f32 %v1444_v58, 0.0  ;;  %v1662_v24 = vmax.f32 %v1557_v13, 0.0  ;;  %2014 = vmatmul.mubr.bf16.gmra.mrb[76].mxu0 %v4064_v11  ;;  %2127 = vmatmul.mubr.bf16.gmra.mrb[76].mxu1 %v4064_v11  ;;  %v4098_v58 = vld [vmem:[%s4392_s5 + $0x28] sm:$0xff]  }
 0x211   : > { %v1771_v57 = vpack.c.bf16 %v1659_v55, %v1651_v61  ;;  %v1773_v23 = vpack.c.bf16 %v1661_v53, %v1653_v63  ;;  %2023 = vmatprep.mubr.bf16.mxu0 %v4402_v5  ;;  %2136 = vmatprep.mubr.bf16.mxu1 %v4402_v5 }
 0x212   : > { %v1772_v15 = vpack.c.bf16 %v1660_v26, %v1652_v46  ;;  %v1774_v22 = vpack.c.bf16 %v1662_v24, %v1654_v21  ;;  %v1447_v42 = vpop.f32.mrb[48].mxu0  ;;  %v1560_v0 = vpop.f32.mrb[48].mxu1 }
 0x213   : > { %v1448_v30 = vadd.f32 %v1447_v42, %v3960_v2  ;;  %v1561_v6 = vadd.f32 %v1560_v0, %v3960_v2  ;;  %v1449_v16 = vpop.f32.mrb[49].mxu0  ;;  %v1562_v18 = vpop.f32.mrb[49].mxu1 }
 0x214   : > { %v1450_v50 = vadd.f32 %v1449_v16, %v3960_v2  ;;  %v1563_v62 = vadd.f32 %v1562_v18, %v3960_v2  ;;  %v1451_v45 = vpop.f32.mrb[50].mxu0  ;;  %v1564_v32 = vpop.f32.mrb[50].mxu1  ;;  %2183 = vmatprep.subr.bf16.mxu0 %v1772_v15  ;;  %2296 = vmatprep.subr.bf16.mxu1 %v1774_v22 }
 0x215   : > { %v1452_v10 = vadd.f32 %v1451_v45, %v3958_v52  ;;  %v1565_v9 = vadd.f32 %v1564_v32, %v3958_v52  ;;  %v1453_v19 = vpop.f32.mrb[51].mxu0  ;;  %v1566_v31 = vpop.f32.mrb[51].mxu1  ;;  %2184 = vmatpush1.bf16.msra.mxu0 %v1771_v57  ;;  %2297 = vmatpush1.bf16.msra.mxu1 %v1773_v23  ;;  %v1667_v33 = vmax.f32 %v1448_v30, 0.0  ;;  %v1669_v20 = vmax.f32 %v1561_v6, 0.0 }
 0x216   : > { %v1454_v14 = vadd.f32 %v1453_v19, %v3958_v52  ;;  %v1567_v2 = vadd.f32 %v1566_v31, %v3958_v52  ;;  %v1668_v36 = vmax.f32 %v1450_v50, 0.0  ;;  %v1670_v8 = vmax.f32 %v1563_v62, 0.0  ;;  %v4115_v31 = vld [vmem:[%s4392_s5 + $0x30] sm:$0xff]  }
 0x217   : > { %v1675_v56 = vmax.f32 %v1452_v10, 0.0  ;;  %v1677_v25 = vmax.f32 %v1565_v9, 0.0 }
 0x218   : > { %v1676_v29 = vmax.f32 %v1454_v14, 0.0  ;;  %v1678_v34 = vmax.f32 %v1567_v2, 0.0  ;;  %2024 = vmatmul.mubr.bf16.gmra.mrb[80].mxu0 %v4081_v51  ;;  %2137 = vmatmul.mubr.bf16.gmra.mrb[80].mxu1 %v4081_v51 }
 0x219   : > { %v1779_v37 = vpack.c.bf16 %v1675_v56, %v1667_v33  ;;  %v1781_v59 = vpack.c.bf16 %v1677_v25, %v1669_v20  ;;  %2033 = vmatprep.mubr.bf16.mxu0 %v4402_v5  ;;  %2146 = vmatprep.mubr.bf16.mxu1 %v4402_v5 }
 0x21a   : > { %v1780_v60 = vpack.c.bf16 %v1676_v29, %v1668_v36  ;;  %v1782_v52 = vpack.c.bf16 %v1678_v34, %v1670_v8  ;;  %v1457_v39 = vpop.f32.mrb[52].mxu0  ;;  %v1570_v40 = vpop.f32.mrb[52].mxu1 }
 0x21b   : > { %v1458_v7 = vadd.f32 %v1457_v39, %v3972_v54  ;;  %v1571_v12 = vadd.f32 %v1570_v40, %v3972_v54  ;;  %v1459_v43 = vpop.f32.mrb[53].mxu0  ;;  %v1572_v47 = vpop.f32.mrb[53].mxu1 }
 0x21c   : > { %v1460_v44 = vadd.f32 %v1459_v43, %v3972_v54  ;;  %v1573_v48 = vadd.f32 %v1572_v47, %v3972_v54  ;;  %v1461_v3 = vpop.f32.mrb[54].mxu0  ;;  %v1574_v41 = vpop.f32.mrb[54].mxu1  ;;  %2185 = vmatprep.subr.bf16.mxu0 %v1780_v60  ;;  %2298 = vmatprep.subr.bf16.mxu1 %v1782_v52 }
 0x21d   : > { %v1462_v13 = vadd.f32 %v1461_v3, %v3970_v27  ;;  %v1575_v61 = vadd.f32 %v1574_v41, %v3970_v27  ;;  %v1463_v63 = vpop.f32.mrb[55].mxu0  ;;  %v1576_v55 = vpop.f32.mrb[55].mxu1  ;;  %2186 = vmatpush1.bf16.msra.mxu0 %v1779_v37  ;;  %2299 = vmatpush1.bf16.msra.mxu1 %v1781_v59  ;;  %v1683_v46 = vmax.f32 %v1458_v7, 0.0  ;;  %v1685_v21 = vmax.f32 %v1571_v12, 0.0 }
 0x21e   : > { %v1464_v53 = vadd.f32 %v1463_v63, %v3970_v27  ;;  %v1577_v54 = vadd.f32 %v1576_v55, %v3970_v27  ;;  %v1684_v57 = vmax.f32 %v1460_v44, 0.0  ;;  %v1686_v23 = vmax.f32 %v1573_v48, 0.0  ;;  %v2976_v63 = vld [vmem:[%s4392_s5 + $0x38] sm:$0xff]  }
 0x21f   : > { %v1691_v26 = vmax.f32 %v1462_v13, 0.0  ;;  %v1693_v24 = vmax.f32 %v1575_v61, 0.0 }
 0x220   : > { %v1692_v15 = vmax.f32 %v1464_v53, 0.0  ;;  %v1694_v22 = vmax.f32 %v1577_v54, 0.0  ;;  %2034 = vmatmul.mubr.bf16.gmra.mrb[84].mxu0 %v4098_v58  ;;  %2147 = vmatmul.mubr.bf16.gmra.mrb[84].mxu1 %v4098_v58 }
 0x221   : > { %v1787_v42 = vpack.c.bf16 %v1691_v26, %v1683_v46  ;;  %v1789_v0 = vpack.c.bf16 %v1693_v24, %v1685_v21  ;;  %2043 = vmatprep.mubr.bf16.mxu0 %v4402_v5  ;;  %2156 = vmatprep.mubr.bf16.mxu1 %v4402_v5 }
 0x222   : > { %v1788_v30 = vpack.c.bf16 %v1692_v15, %v1684_v57  ;;  %v1790_v27 = vpack.c.bf16 %v1694_v22, %v1686_v23  ;;  %v1467_v6 = vpop.f32.mrb[56].mxu0  ;;  %v1580_v16 = vpop.f32.mrb[56].mxu1 }
 0x223   : > { %v1468_v18 = vadd.f32 %v1467_v6, %v3984_v1  ;;  %v1581_v50 = vadd.f32 %v1580_v16, %v3984_v1  ;;  %v1469_v62 = vpop.f32.mrb[57].mxu0  ;;  %v1582_v45 = vpop.f32.mrb[57].mxu1 }
 0x224   : > { %v1470_v32 = vadd.f32 %v1469_v62, %v3984_v1  ;;  %v1583_v10 = vadd.f32 %v1582_v45, %v3984_v1  ;;  %v1471_v9 = vpop.f32.mrb[58].mxu0  ;;  %v1584_v19 = vpop.f32.mrb[58].mxu1  ;;  %2187 = vmatprep.subr.bf16.mxu0 %v1788_v30  ;;  %2300 = vmatprep.subr.bf16.mxu1 %v1790_v27 }
 0x225   : > { %v1472_v14 = vadd.f32 %v1471_v9, %v3982_v38  ;;  %v1585_v2 = vadd.f32 %v1584_v19, %v3982_v38  ;;  %v1473_v33 = vpop.f32.mrb[59].mxu0  ;;  %v1586_v20 = vpop.f32.mrb[59].mxu1  ;;  %2188 = vmatpush1.bf16.msra.mxu0 %v1787_v42  ;;  %2301 = vmatpush1.bf16.msra.mxu1 %v1789_v0  ;;  %v1699_v25 = vmax.f32 %v1468_v18, 0.0  ;;  %v1701_v36 = vmax.f32 %v1581_v50, 0.0 }
 0x226   : > { %v1474_v56 = vadd.f32 %v1473_v33, %v3982_v38  ;;  %v1587_v1 = vadd.f32 %v1586_v20, %v3982_v38  ;;  %v1700_v34 = vmax.f32 %v1470_v32, 0.0  ;;  %v1702_v37 = vmax.f32 %v1583_v10, 0.0 }
 0x227   : > { %v1707_v8 = vmax.f32 %v1472_v14, 0.0  ;;  %v1709_v29 = vmax.f32 %v1585_v2, 0.0 }
 0x228   : > { %v1708_v59 = vmax.f32 %v1474_v56, 0.0  ;;  %v1710_v60 = vmax.f32 %v1587_v1, 0.0  ;;  %2044 = vmatmul.mubr.bf16.gmra.mrb[88].mxu0 %v4115_v31  ;;  %2157 = vmatmul.mubr.bf16.gmra.mrb[88].mxu1 %v4115_v31 }
 0x229   : > { %v1795_v52 = vpack.c.bf16 %v1707_v8, %v1699_v25  ;;  %v1797_v39 = vpack.c.bf16 %v1709_v29, %v1701_v36  ;;  %2053 = vmatprep.mubr.bf16.mxu0 %v4402_v5  ;;  %2166 = vmatprep.mubr.bf16.mxu1 %v4402_v5 }
 0x22a   : > { %v1796_v40 = vpack.c.bf16 %v1708_v59, %v1700_v34  ;;  %v1798_v38 = vpack.c.bf16 %v1710_v60, %v1702_v37  ;;  %v1477_v7 = vpop.f32.mrb[60].mxu0  ;;  %v1590_v12 = vpop.f32.mrb[60].mxu1 }
 0x22b   : > { %v1478_v43 = vadd.f32 %v1477_v7, %v3996_v35  ;;  %v1591_v47 = vadd.f32 %v1590_v12, %v3996_v35  ;;  %v1479_v44 = vpop.f32.mrb[61].mxu0  ;;  %v1592_v48 = vpop.f32.mrb[61].mxu1 }
 0x22c   : > { %v1480_v3 = vadd.f32 %v1479_v44, %v3996_v35  ;;  %v1593_v41 = vadd.f32 %v1592_v48, %v3996_v35  ;;  %v1481_v13 = vpop.f32.mrb[62].mxu0  ;;  %v1594_v61 = vpop.f32.mrb[62].mxu1  ;;  %2189 = vmatprep.subr.bf16.mxu0 %v1796_v40  ;;  %2302 = vmatprep.subr.bf16.mxu1 %v1798_v38 }
 0x22d   : > { %v1482_v55 = vadd.f32 %v1481_v13, %v3994_v28  ;;  %v1595_v53 = vadd.f32 %v1594_v61, %v3994_v28  ;;  %v1483_v54 = vpop.f32.mrb[63].mxu0  ;;  %v1596_v46 = vpop.f32.mrb[63].mxu1  ;;  %2190 = vmatpush1.bf16.msra.mxu0 %v1795_v52  ;;  %2303 = vmatpush1.bf16.msra.mxu1 %v1797_v39  ;;  %v1715_v26 = vmax.f32 %v1478_v43, 0.0  ;;  %v1717_v24 = vmax.f32 %v1591_v47, 0.0 }
 0x22e   : > { %v1484_v21 = vadd.f32 %v1483_v54, %v3994_v28  ;;  %v1597_v35 = vadd.f32 %v1596_v46, %v3994_v28  ;;  %v1716_v15 = vmax.f32 %v1480_v3, 0.0  ;;  %v1718_v22 = vmax.f32 %v1593_v41, 0.0  ;;  %v4168_v28 = vpop.permute.xlu1 %1830 }
 0x22f   : > { %v1723_v57 = vmax.f32 %v1482_v55, 0.0  ;;  %v1725_v23 = vmax.f32 %v1595_v53, 0.0 }
 0x230   : > { %v1724_v42 = vmax.f32 %v1484_v21, 0.0  ;;  %v1726_v0 = vmax.f32 %v1597_v35, 0.0  ;;  %2054 = vmatmul.mubr.bf16.gmra.mrb[92].mxu0 %v2976_v63  ;;  %2167 = vmatmul.mubr.bf16.gmra.mrb[92].mxu1 %v2976_v63 }
 0x231   : > { %v1803_v30 = vpack.c.bf16 %v1723_v57, %v1715_v26  ;;  %v1805_v27 = vpack.c.bf16 %v1725_v23, %v1717_v24  ;;  %2209 = vmatprep.mubr.bf16.mxu0 %v4402_v5  ;;  %2322 = vmatprep.mubr.bf16.mxu1 %v4402_v5 }
 0x232   : > { %v1804_v6 = vpack.c.bf16 %v1724_v42, %v1716_v15  ;;  %v1806_v16 = vpack.c.bf16 %v1726_v0, %v1718_v22  ;;  %v4180_v34 = vpop.permute.xlu1 %1840 }
 0x234   : > { %2191 = vmatprep.subr.bf16.mxu0 %v1804_v6  ;;  %2304 = vmatprep.subr.bf16.mxu1 %v1806_v16 }
 0x235   : > { %2192 = vmatpush1.bf16.msra.mxu0 %v1803_v30  ;;  %2305 = vmatpush1.bf16.msra.mxu1 %v1805_v27 }
 0x236   : > { %v4192_v22 = vpop.permute.xlu1 %1850 }
 0x238   : > { %2210 = vmatmul.mubr.bf16.vlgmr.msra.gmra.mrb[96].mxu0 %v4013_v17  ;;  %2323 = vmatmul.mubr.bf16.vlgmr.msra.gmra.mrb[96].mxu1 %v4013_v17  ;;  %v4170_v17 = vpop.permute.xlu0 %1825 }
 0x239   : > { %2219 = vmatprep.mubr.bf16.mxu0 %v4402_v5  ;;  %2332 = vmatprep.mubr.bf16.mxu1 %v4402_v5 }
 0x23c   : > { %v4182_v37 = vpop.permute.xlu0 %1835 }
 0x240   : > { %2220 = vmatmul.mubr.bf16.gmra.mrb[100].mxu0 %v4030_v4  ;;  %2333 = vmatmul.mubr.bf16.gmra.mrb[100].mxu1 %v4030_v4  ;;  %v4194_v42 = vpop.permute.xlu0 %1845 }
 0x241   : > { %2229 = vmatprep.mubr.bf16.mxu0 %v4402_v5  ;;  %2342 = vmatprep.mubr.bf16.mxu1 %v4402_v5 }
 0x248   : > { %2230 = vmatmul.mubr.bf16.gmra.mrb[104].mxu0 %v4047_v49  ;;  %2343 = vmatmul.mubr.bf16.gmra.mrb[104].mxu1 %v4047_v49 }
 0x249   : > { %2239 = vmatprep.mubr.bf16.mxu0 %v4402_v5  ;;  %2352 = vmatprep.mubr.bf16.mxu1 %v4402_v5 }
 0x250   : > { %2240 = vmatmul.mubr.bf16.gmra.mrb[108].mxu0 %v4064_v11  ;;  %2353 = vmatmul.mubr.bf16.gmra.mrb[108].mxu1 %v4064_v11 }
 0x251   : > { %2249 = vmatprep.mubr.bf16.mxu0 %v4402_v5  ;;  %2362 = vmatprep.mubr.bf16.mxu1 %v4402_v5 }
 0x258   : > { %2250 = vmatmul.mubr.bf16.gmra.mrb[112].mxu0 %v4081_v51  ;;  %2363 = vmatmul.mubr.bf16.gmra.mrb[112].mxu1 %v4081_v51 }
 0x259   : > { %2259 = vmatprep.mubr.bf16.mxu0 %v4402_v5  ;;  %2372 = vmatprep.mubr.bf16.mxu1 %v4402_v5 }
 0x260   : > { %2260 = vmatmul.mubr.bf16.gmra.mrb[116].mxu0 %v4098_v58  ;;  %2373 = vmatmul.mubr.bf16.gmra.mrb[116].mxu1 %v4098_v58 }
 0x261   : > { %2269 = vmatprep.mubr.bf16.mxu0 %v4402_v5  ;;  %2382 = vmatprep.mubr.bf16.mxu1 %v4402_v5 }
 0x268   : > { %2270 = vmatmul.mubr.bf16.gmra.mrb[120].mxu0 %v4115_v31  ;;  %2383 = vmatmul.mubr.bf16.gmra.mrb[120].mxu1 %v4115_v31 }
 0x269   : > { %2279 = vmatprep.mubr.bf16.mxu0 %v4402_v5  ;;  %2392 = vmatprep.mubr.bf16.mxu1 %v4402_v5 }
 0x270   : > { %2280 = vmatmul.mubr.bf16.gmra.mrb[124].mxu0 %v2976_v63  ;;  %2393 = vmatmul.mubr.bf16.gmra.mrb[124].mxu1 %v2976_v63 }
 0x271   : > { %2628 = vmatprep.mubr.bf16.mxu0 %v4402_v5  ;;  %2669 = vmatprep.mubr.bf16.mxu1 %v4402_v5 }
 0x2cb   : > { %v1985_v4 = vpop.f32.mrb[64].mxu0  ;;  %v2098_v49 = vpop.f32.mrb[64].mxu1 }
 0x2cc   : > { %v1986_v11 = vadd.f32 %v1985_v4, %v4170_v17  ;;  %v2099_v51 = vadd.f32 %v2098_v49, %v4170_v17  ;;  %v1987_v58 = vpop.f32.mrb[65].mxu0  ;;  %v2100_v18 = vpop.f32.mrb[65].mxu1 }
 0x2cd   : > { %v1988_v50 = vadd.f32 %v1987_v58, %v4170_v17  ;;  %v2101_v62 = vadd.f32 %v2100_v18, %v4170_v17  ;;  %v1989_v45 = vpop.f32.mrb[66].mxu0  ;;  %v2102_v32 = vpop.f32.mrb[66].mxu1 }
 0x2ce   : > { %v1990_v10 = vadd.f32 %v1989_v45, %v4168_v28  ;;  %v2103_v9 = vadd.f32 %v2102_v32, %v4168_v28  ;;  %v1991_v19 = vpop.f32.mrb[67].mxu0  ;;  %v2104_v31 = vpop.f32.mrb[67].mxu1  ;;  %v2403_v33 = vmax.f32 %v1986_v11, 0.0  ;;  %v2405_v20 = vmax.f32 %v2099_v51, 0.0 }
 0x2cf   : > { %v1992_v14 = vadd.f32 %v1991_v19, %v4168_v28  ;;  %v2105_v2 = vadd.f32 %v2104_v31, %v4168_v28  ;;  %v2404_v25 = vmax.f32 %v1988_v50, 0.0  ;;  %v2406_v36 = vmax.f32 %v2101_v62, 0.0 }
 0x2d0   : > { %v2411_v56 = vmax.f32 %v1990_v10, 0.0  ;;  %v2413_v1 = vmax.f32 %v2103_v9, 0.0 }
 0x2d1   : > { %v2412_v8 = vmax.f32 %v1992_v14, 0.0  ;;  %v2414_v29 = vmax.f32 %v2105_v2, 0.0 }
 0x2d2   : > { %v2532_v59 = vpack.c.bf16 %v2411_v56, %v2403_v33  ;;  %v2534_v60 = vpack.c.bf16 %v2413_v1, %v2405_v20 }
 0x2d3   : > { %v2533_v52 = vpack.c.bf16 %v2412_v8, %v2404_v25  ;;  %v2535_v39 = vpack.c.bf16 %v2414_v29, %v2406_v36  ;;  %v1995_v40 = vpop.f32.mrb[68].mxu0  ;;  %v2108_v38 = vpop.f32.mrb[68].mxu1 }
 0x2d4   : > { %v1996_v7 = vadd.f32 %v1995_v40, %v4182_v37  ;;  %v2109_v12 = vadd.f32 %v2108_v38, %v4182_v37  ;;  %v1997_v43 = vpop.f32.mrb[69].mxu0  ;;  %v2110_v47 = vpop.f32.mrb[69].mxu1 }
 0x2d5   : > { %v1998_v44 = vadd.f32 %v1997_v43, %v4182_v37  ;;  %v2111_v48 = vadd.f32 %v2110_v47, %v4182_v37  ;;  %v1999_v3 = vpop.f32.mrb[70].mxu0  ;;  %v2112_v41 = vpop.f32.mrb[70].mxu1  ;;  %2596 = vmatprep.subr.bf16.mxu0 %v2533_v52  ;;  %2637 = vmatprep.subr.bf16.mxu1 %v2535_v39 }
 0x2d6   : > { %v2000_v13 = vadd.f32 %v1999_v3, %v4180_v34  ;;  %v2113_v61 = vadd.f32 %v2112_v41, %v4180_v34  ;;  %v2001_v63 = vpop.f32.mrb[71].mxu0  ;;  %v2114_v55 = vpop.f32.mrb[71].mxu1  ;;  %2597 = vmatpush1.bf16.msra.mxu0 %v2532_v59  ;;  %2638 = vmatpush1.bf16.msra.mxu1 %v2534_v60  ;;  %v2419_v46 = vmax.f32 %v1996_v7, 0.0  ;;  %v2421_v21 = vmax.f32 %v2109_v12, 0.0 }
 0x2d7   : > { %v2002_v53 = vadd.f32 %v2001_v63, %v4180_v34  ;;  %v2115_v54 = vadd.f32 %v2114_v55, %v4180_v34  ;;  %v2420_v24 = vmax.f32 %v1998_v44, 0.0  ;;  %v2422_v57 = vmax.f32 %v2111_v48, 0.0  ;;  %v4204_v29 = vpop.permute.xlu1 %1860  ;;  %v4206_v59 = vpop.permute.xlu0 %1855 }
 0x2d8   : > { %v2427_v35 = vmax.f32 %v2000_v13, 0.0  ;;  %v2429_v26 = vmax.f32 %v2113_v61, 0.0 }
 0x2d9   : > { %v2428_v23 = vmax.f32 %v2002_v53, 0.0  ;;  %v2430_v15 = vmax.f32 %v2115_v54, 0.0 }
 0x2da   : > { %v2540_v0 = vpack.c.bf16 %v2427_v35, %v2419_v46  ;;  %v2542_v30 = vpack.c.bf16 %v2429_v26, %v2421_v21 }
 0x2db   : > { %v2541_v27 = vpack.c.bf16 %v2428_v23, %v2420_v24  ;;  %v2543_v6 = vpack.c.bf16 %v2430_v15, %v2422_v57  ;;  %v2005_v16 = vpop.f32.mrb[72].mxu0  ;;  %v2118_v4 = vpop.f32.mrb[72].mxu1 }
 0x2dc   : > { %v2006_v49 = vadd.f32 %v2005_v16, %v4194_v42  ;;  %v2119_v11 = vadd.f32 %v2118_v4, %v4194_v42  ;;  %v2007_v51 = vpop.f32.mrb[73].mxu0  ;;  %v2120_v58 = vpop.f32.mrb[73].mxu1 }
 0x2dd   : > { %v2008_v18 = vadd.f32 %v2007_v51, %v4194_v42  ;;  %v2121_v50 = vadd.f32 %v2120_v58, %v4194_v42  ;;  %v2009_v62 = vpop.f32.mrb[74].mxu0  ;;  %v2122_v45 = vpop.f32.mrb[74].mxu1  ;;  %2598 = vmatprep.subr.bf16.mxu0 %v2541_v27  ;;  %2639 = vmatprep.subr.bf16.mxu1 %v2543_v6 }
 0x2de   : > { %v2010_v32 = vadd.f32 %v2009_v62, %v4192_v22  ;;  %v2123_v10 = vadd.f32 %v2122_v45, %v4192_v22  ;;  %v2011_v9 = vpop.f32.mrb[75].mxu0  ;;  %v2124_v19 = vpop.f32.mrb[75].mxu1  ;;  %2599 = vmatpush1.bf16.msra.mxu0 %v2540_v0  ;;  %2640 = vmatpush1.bf16.msra.mxu1 %v2542_v30  ;;  %v2435_v2 = vmax.f32 %v2006_v49, 0.0  ;;  %v2437_v33 = vmax.f32 %v2119_v11, 0.0 }
 0x2df   : > { %v2012_v31 = vadd.f32 %v2011_v9, %v4192_v22  ;;  %v2125_v14 = vadd.f32 %v2124_v19, %v4192_v22  ;;  %v2436_v1 = vmax.f32 %v2008_v18, 0.0  ;;  %v2438_v25 = vmax.f32 %v2121_v50, 0.0  ;;  %v4216_v30 = vpop.permute.xlu1 %1870  ;;  %v4218_v27 = vpop.permute.xlu0 %1865 }
 0x2e0   : > { %v2443_v20 = vmax.f32 %v2010_v32, 0.0  ;;  %v2445_v56 = vmax.f32 %v2123_v10, 0.0 }
 0x2e1   : > { %v2444_v36 = vmax.f32 %v2012_v31, 0.0  ;;  %v2446_v8 = vmax.f32 %v2125_v14, 0.0 }
 0x2e2   : > { %v2548_v60 = vpack.c.bf16 %v2443_v20, %v2435_v2  ;;  %v2550_v52 = vpack.c.bf16 %v2445_v56, %v2437_v33 }
 0x2e3   : > { %v2549_v39 = vpack.c.bf16 %v2444_v36, %v2436_v1  ;;  %v2551_v40 = vpack.c.bf16 %v2446_v8, %v2438_v25  ;;  %v2015_v38 = vpop.f32.mrb[76].mxu0  ;;  %v2128_v7 = vpop.f32.mrb[76].mxu1 }
 0x2e4   : > { %v2016_v12 = vadd.f32 %v2015_v38, %v4206_v59  ;;  %v2129_v43 = vadd.f32 %v2128_v7, %v4206_v59  ;;  %v2017_v47 = vpop.f32.mrb[77].mxu0  ;;  %v2130_v44 = vpop.f32.mrb[77].mxu1 }
 0x2e5   : > { %v2018_v48 = vadd.f32 %v2017_v47, %v4206_v59  ;;  %v2131_v3 = vadd.f32 %v2130_v44, %v4206_v59  ;;  %v2019_v41 = vpop.f32.mrb[78].mxu0  ;;  %v2132_v13 = vpop.f32.mrb[78].mxu1  ;;  %2600 = vmatprep.subr.bf16.mxu0 %v2549_v39  ;;  %2641 = vmatprep.subr.bf16.mxu1 %v2551_v40 }
 0x2e6   : > { %v2020_v61 = vadd.f32 %v2019_v41, %v4204_v29  ;;  %v2133_v63 = vadd.f32 %v2132_v13, %v4204_v29  ;;  %v2021_v55 = vpop.f32.mrb[79].mxu0  ;;  %v2134_v53 = vpop.f32.mrb[79].mxu1  ;;  %2601 = vmatpush1.bf16.msra.mxu0 %v2548_v60  ;;  %2642 = vmatpush1.bf16.msra.mxu1 %v2550_v52  ;;  %v2451_v21 = vmax.f32 %v2016_v12, 0.0  ;;  %v2453_v35 = vmax.f32 %v2129_v43, 0.0 }
 0x2e7   : > { %v2022_v54 = vadd.f32 %v2021_v55, %v4204_v29  ;;  %v2135_v46 = vadd.f32 %v2134_v53, %v4204_v29  ;;  %v2452_v57 = vmax.f32 %v2018_v48, 0.0  ;;  %v2454_v23 = vmax.f32 %v2131_v3, 0.0  ;;  %v4228_v40 = vpop.permute.xlu1 %1880  ;;  %v4230_v38 = vpop.permute.xlu0 %1875 }
 0x2e8   : > { %v2459_v26 = vmax.f32 %v2020_v61, 0.0  ;;  %v2461_v24 = vmax.f32 %v2133_v63, 0.0 }
 0x2e9   : > { %v2460_v15 = vmax.f32 %v2022_v54, 0.0  ;;  %v2462_v0 = vmax.f32 %v2135_v46, 0.0 }
 0x2ea   : > { %v2556_v6 = vpack.c.bf16 %v2459_v26, %v2451_v21  ;;  %v2558_v16 = vpack.c.bf16 %v2461_v24, %v2453_v35 }
 0x2eb   : > { %v2557_v4 = vpack.c.bf16 %v2460_v15, %v2452_v57  ;;  %v2559_v49 = vpack.c.bf16 %v2462_v0, %v2454_v23  ;;  %v2025_v11 = vpop.f32.mrb[80].mxu0  ;;  %v2138_v51 = vpop.f32.mrb[80].mxu1 }
 0x2ec   : > { %v2026_v58 = vadd.f32 %v2025_v11, %v4218_v27  ;;  %v2139_v18 = vadd.f32 %v2138_v51, %v4218_v27  ;;  %v2027_v50 = vpop.f32.mrb[81].mxu0  ;;  %v2140_v62 = vpop.f32.mrb[81].mxu1 }
 0x2ed   : > { %v2028_v45 = vadd.f32 %v2027_v50, %v4218_v27  ;;  %v2141_v32 = vadd.f32 %v2140_v62, %v4218_v27  ;;  %v2029_v10 = vpop.f32.mrb[82].mxu0  ;;  %v2142_v9 = vpop.f32.mrb[82].mxu1  ;;  %2602 = vmatprep.subr.bf16.mxu0 %v2557_v4  ;;  %2643 = vmatprep.subr.bf16.mxu1 %v2559_v49 }
 0x2ee   : > { %v2030_v19 = vadd.f32 %v2029_v10, %v4216_v30  ;;  %v2143_v31 = vadd.f32 %v2142_v9, %v4216_v30  ;;  %v2031_v14 = vpop.f32.mrb[83].mxu0  ;;  %v2144_v2 = vpop.f32.mrb[83].mxu1  ;;  %2603 = vmatpush1.bf16.msra.mxu0 %v2556_v6  ;;  %2644 = vmatpush1.bf16.msra.mxu1 %v2558_v16  ;;  %v2467_v56 = vmax.f32 %v2026_v58, 0.0  ;;  %v2469_v1 = vmax.f32 %v2139_v18, 0.0 }
 0x2ef   : > { %v2032_v33 = vadd.f32 %v2031_v14, %v4216_v30  ;;  %v2145_v20 = vadd.f32 %v2144_v2, %v4216_v30  ;;  %v2468_v8 = vmax.f32 %v2028_v45, 0.0  ;;  %v2470_v60 = vmax.f32 %v2141_v32, 0.0  ;;  %v4240_v51 = vpop.permute.xlu1 %1890  ;;  %v4242_v58 = vpop.permute.xlu0 %1885 }
 0x2f0   : > { %v2475_v25 = vmax.f32 %v2030_v19, 0.0  ;;  %v2477_v36 = vmax.f32 %v2143_v31, 0.0 }
 0x2f1   : > { %v2476_v52 = vmax.f32 %v2032_v33, 0.0  ;;  %v2478_v39 = vmax.f32 %v2145_v20, 0.0 }
 0x2f2   : > { %v2564_v7 = vpack.c.bf16 %v2475_v25, %v2467_v56  ;;  %v2566_v12 = vpack.c.bf16 %v2477_v36, %v2469_v1 }
 0x2f3   : > { %v2565_v43 = vpack.c.bf16 %v2476_v52, %v2468_v8  ;;  %v2567_v47 = vpack.c.bf16 %v2478_v39, %v2470_v60  ;;  %v2035_v44 = vpop.f32.mrb[84].mxu0  ;;  %v2148_v48 = vpop.f32.mrb[84].mxu1 }
 0x2f4   : > { %v2036_v3 = vadd.f32 %v2035_v44, %v4230_v38  ;;  %v2149_v41 = vadd.f32 %v2148_v48, %v4230_v38  ;;  %v2037_v13 = vpop.f32.mrb[85].mxu0  ;;  %v2150_v61 = vpop.f32.mrb[85].mxu1 }
 0x2f5   : > { %v2038_v63 = vadd.f32 %v2037_v13, %v4230_v38  ;;  %v2151_v55 = vadd.f32 %v2150_v61, %v4230_v38  ;;  %v2039_v53 = vpop.f32.mrb[86].mxu0  ;;  %v2152_v54 = vpop.f32.mrb[86].mxu1  ;;  %2604 = vmatprep.subr.bf16.mxu0 %v2565_v43  ;;  %2645 = vmatprep.subr.bf16.mxu1 %v2567_v47 }
 0x2f6   : > { %v2040_v46 = vadd.f32 %v2039_v53, %v4228_v40  ;;  %v2153_v21 = vadd.f32 %v2152_v54, %v4228_v40  ;;  %v2041_v35 = vpop.f32.mrb[87].mxu0  ;;  %v2154_v26 = vpop.f32.mrb[87].mxu1  ;;  %2605 = vmatpush1.bf16.msra.mxu0 %v2564_v7  ;;  %2646 = vmatpush1.bf16.msra.mxu1 %v2566_v12  ;;  %v2483_v23 = vmax.f32 %v2036_v3, 0.0  ;;  %v2485_v15 = vmax.f32 %v2149_v41, 0.0 }
 0x2f7   : > { %v2042_v24 = vadd.f32 %v2041_v35, %v4228_v40  ;;  %v2155_v57 = vadd.f32 %v2154_v26, %v4228_v40  ;;  %v2484_v16 = vmax.f32 %v2038_v63, 0.0  ;;  %v2486_v4 = vmax.f32 %v2151_v55, 0.0  ;;  %v4252_v41 = vpop.permute.xlu1 %1900  ;;  %v4254_v13 = vpop.permute.xlu0 %1895 }
 0x2f8   : > { %v2491_v0 = vmax.f32 %v2040_v46, 0.0  ;;  %v2493_v6 = vmax.f32 %v2153_v21, 0.0 }
 0x2f9   : > { %v2492_v49 = vmax.f32 %v2042_v24, 0.0  ;;  %v2494_v11 = vmax.f32 %v2155_v57, 0.0 }
 0x2fa   : > { %v2572_v18 = vpack.c.bf16 %v2491_v0, %v2483_v23  ;;  %v2574_v50 = vpack.c.bf16 %v2493_v6, %v2485_v15 }
 0x2fb   : > { %v2573_v62 = vpack.c.bf16 %v2492_v49, %v2484_v16  ;;  %v2575_v45 = vpack.c.bf16 %v2494_v11, %v2486_v4  ;;  %v2045_v32 = vpop.f32.mrb[88].mxu0  ;;  %v2158_v10 = vpop.f32.mrb[88].mxu1 }
 0x2fc   : > { %v2046_v9 = vadd.f32 %v2045_v32, %v4242_v58  ;;  %v2159_v19 = vadd.f32 %v2158_v10, %v4242_v58  ;;  %v2047_v31 = vpop.f32.mrb[89].mxu0  ;;  %v2160_v14 = vpop.f32.mrb[89].mxu1 }
 0x2fd   : > { %v2048_v2 = vadd.f32 %v2047_v31, %v4242_v58  ;;  %v2161_v33 = vadd.f32 %v2160_v14, %v4242_v58  ;;  %v2049_v20 = vpop.f32.mrb[90].mxu0  ;;  %v2162_v56 = vpop.f32.mrb[90].mxu1  ;;  %2606 = vmatprep.subr.bf16.mxu0 %v2573_v62  ;;  %2647 = vmatprep.subr.bf16.mxu1 %v2575_v45 }
 0x2fe   : > { %v2050_v1 = vadd.f32 %v2049_v20, %v4240_v51  ;;  %v2163_v25 = vadd.f32 %v2162_v56, %v4240_v51  ;;  %v2051_v36 = vpop.f32.mrb[91].mxu0  ;;  %v2164_v8 = vpop.f32.mrb[91].mxu1  ;;  %2607 = vmatpush1.bf16.msra.mxu0 %v2572_v18  ;;  %2648 = vmatpush1.bf16.msra.mxu1 %v2574_v50  ;;  %v2499_v39 = vmax.f32 %v2046_v9, 0.0  ;;  %v2501_v7 = vmax.f32 %v2159_v19, 0.0 }
 0x2ff   : > { %v2052_v60 = vadd.f32 %v2051_v36, %v4240_v51  ;;  %v2165_v52 = vadd.f32 %v2164_v8, %v4240_v51  ;;  %v2500_v47 = vmax.f32 %v2048_v2, 0.0  ;;  %v2502_v44 = vmax.f32 %v2161_v33, 0.0 }
 0x300   : > { %v2507_v12 = vmax.f32 %v2050_v1, 0.0  ;;  %v2509_v43 = vmax.f32 %v2163_v25, 0.0 }
 0x301   : > { %v2508_v48 = vmax.f32 %v2052_v60, 0.0  ;;  %v2510_v3 = vmax.f32 %v2165_v52, 0.0 }
 0x302   : > { %v2580_v61 = vpack.c.bf16 %v2507_v12, %v2499_v39  ;;  %v2582_v63 = vpack.c.bf16 %v2509_v43, %v2501_v7 }
 0x303   : > { %v2581_v55 = vpack.c.bf16 %v2508_v48, %v2500_v47  ;;  %v2583_v53 = vpack.c.bf16 %v2510_v3, %v2502_v44  ;;  %v2055_v54 = vpop.f32.mrb[92].mxu0  ;;  %v2168_v46 = vpop.f32.mrb[92].mxu1  ;;  %v4273_v3 = vld [vmem:[%s4394_s7] sm:$0x1] }
 0x304   : > { %v2056_v21 = vadd.f32 %v2055_v54, %v4254_v13  ;;  %v2169_v35 = vadd.f32 %v2168_v46, %v4254_v13  ;;  %v2057_v26 = vpop.f32.mrb[93].mxu0  ;;  %v2170_v24 = vpop.f32.mrb[93].mxu1 }
 0x305   : > { %v2058_v57 = vadd.f32 %v2057_v26, %v4254_v13  ;;  %v2171_v23 = vadd.f32 %v2170_v24, %v4254_v13  ;;  %v2059_v15 = vpop.f32.mrb[94].mxu0  ;;  %v2172_v0 = vpop.f32.mrb[94].mxu1  ;;  %2608 = vmatprep.subr.bf16.mxu0 %v2581_v55  ;;  %2649 = vmatprep.subr.bf16.mxu1 %v2583_v53 }
 0x306   : > { %v2060_v6 = vadd.f32 %v2059_v15, %v4252_v41  ;;  %v2173_v16 = vadd.f32 %v2172_v0, %v4252_v41  ;;  %v2061_v4 = vpop.f32.mrb[95].mxu0  ;;  %v2174_v49 = vpop.f32.mrb[95].mxu1  ;;  %2609 = vmatpush1.bf16.msra.mxu0 %v2580_v61  ;;  %2650 = vmatpush1.bf16.msra.mxu1 %v2582_v63  ;;  %v2515_v50 = vmax.f32 %v2056_v21, 0.0  ;;  %v2517_v62 = vmax.f32 %v2169_v35, 0.0 }
 0x307   : > { %v2062_v11 = vadd.f32 %v2061_v4, %v4252_v41  ;;  %v2175_v18 = vadd.f32 %v2174_v49, %v4252_v41  ;;  %v2516_v10 = vmax.f32 %v2058_v57, 0.0  ;;  %v2518_v9 = vmax.f32 %v2171_v23, 0.0 }
 0x308   : > { %v2523_v45 = vmax.f32 %v2060_v6, 0.0  ;;  %v2525_v32 = vmax.f32 %v2173_v16, 0.0 }
 0x309   : > { %v2524_v19 = vmax.f32 %v2062_v11, 0.0  ;;  %v2526_v31 = vmax.f32 %v2175_v18, 0.0 }
 0x30a   : > { %v2588_v14 = vpack.c.bf16 %v2523_v45, %v2515_v50  ;;  %v2590_v2 = vpack.c.bf16 %v2525_v32, %v2517_v62 }
 0x30b   : > { %v2589_v33 = vpack.c.bf16 %v2524_v19, %v2516_v10  ;;  %v2591_v20 = vpack.c.bf16 %v2526_v31, %v2518_v9  ;;  %v2211_v56 = vpop.f32.mrb[96].mxu0  ;;  %v2324_v1 = vpop.f32.mrb[96].mxu1 }
 0x30c   : > { %v2212_v25 = vadd.f32 %v2211_v56, %v4170_v17  ;;  %v2325_v36 = vadd.f32 %v2324_v1, %v4170_v17  ;;  %v2213_v8 = vpop.f32.mrb[97].mxu0  ;;  %v2326_v60 = vpop.f32.mrb[97].mxu1 }
 0x30d   : > { %v2214_v52 = vadd.f32 %v2213_v8, %v4170_v17  ;;  %v2327_v39 = vadd.f32 %v2326_v60, %v4170_v17  ;;  %v2215_v7 = vpop.f32.mrb[98].mxu0  ;;  %v2328_v12 = vpop.f32.mrb[98].mxu1  ;;  %2610 = vmatprep.subr.bf16.mxu0 %v2589_v33  ;;  %2651 = vmatprep.subr.bf16.mxu1 %v2591_v20 }
 0x30e   : > { %v2216_v43 = vadd.f32 %v2215_v7, %v4168_v28  ;;  %v2329_v47 = vadd.f32 %v2328_v12, %v4168_v28  ;;  %v2217_v44 = vpop.f32.mrb[99].mxu0  ;;  %v2330_v48 = vpop.f32.mrb[99].mxu1  ;;  %2611 = vmatpush1.bf16.msra.mxu0 %v2588_v14  ;;  %2652 = vmatpush1.bf16.msra.mxu1 %v2590_v2  ;;  %v2407_v63 = vmax.f32 %v2212_v25, 0.0  ;;  %v2409_v55 = vmax.f32 %v2325_v36, 0.0 }
 0x30f   : > { %v2218_v61 = vadd.f32 %v2217_v44, %v4168_v28  ;;  %v2331_v17 = vadd.f32 %v2330_v48, %v4168_v28  ;;  %v2408_v46 = vmax.f32 %v2214_v52, 0.0  ;;  %v2410_v21 = vmax.f32 %v2327_v39, 0.0 }
 0x310   : > { %v2415_v53 = vmax.f32 %v2216_v43, 0.0  ;;  %v2417_v54 = vmax.f32 %v2329_v47, 0.0 }
 0x311   : > { %v2416_v35 = vmax.f32 %v2218_v61, 0.0  ;;  %v2418_v26 = vmax.f32 %v2331_v17, 0.0  ;;  %2629 = vmatmul.mubr.bf16.vlgmr.msra.gmra.mrb[128].mxu0 %v4273_v3  ;;  %2670 = vmatmul.mubr.bf16.vlgmr.msra.gmra.mrb[128].mxu1 %v4273_v3 }
 0x312   : > { %v2536_v24 = vpack.c.bf16 %v2415_v53, %v2407_v63  ;;  %v2538_v57 = vpack.c.bf16 %v2417_v54, %v2409_v55  ;;  %2710 = vmatprep.mubr.bf16.mxu0 %v4402_v5  ;;  %2751 = vmatprep.mubr.bf16.mxu1 %v4402_v5 }
 0x313   : > { %v2537_v23 = vpack.c.bf16 %v2416_v35, %v2408_v46  ;;  %v2539_v28 = vpack.c.bf16 %v2418_v26, %v2410_v21  ;;  %v2221_v15 = vpop.f32.mrb[100].mxu0  ;;  %v2334_v0 = vpop.f32.mrb[100].mxu1 }
 0x314   : > { %v2222_v6 = vadd.f32 %v2221_v15, %v4182_v37  ;;  %v2335_v16 = vadd.f32 %v2334_v0, %v4182_v37  ;;  %v2223_v4 = vpop.f32.mrb[101].mxu0  ;;  %v2336_v49 = vpop.f32.mrb[101].mxu1 }
 0x315   : > { %v2224_v11 = vadd.f32 %v2223_v4, %v4182_v37  ;;  %v2337_v18 = vadd.f32 %v2336_v49, %v4182_v37  ;;  %v2225_v50 = vpop.f32.mrb[102].mxu0  ;;  %v2338_v62 = vpop.f32.mrb[102].mxu1  ;;  %2678 = vmatprep.subr.bf16.mxu0 %v2537_v23  ;;  %2719 = vmatprep.subr.bf16.mxu1 %v2539_v28 }
 0x316   : > { %v2226_v5 = vadd.f32 %v2225_v50, %v4180_v34  ;;  %v2339_v45 = vadd.f32 %v2338_v62, %v4180_v34  ;;  %v2227_v32 = vpop.f32.mrb[103].mxu0  ;;  %v2340_v10 = vpop.f32.mrb[103].mxu1  ;;  %2679 = vmatpush1.bf16.msra.mxu0 %v2536_v24  ;;  %2720 = vmatpush1.bf16.msra.mxu1 %v2538_v57  ;;  %v2423_v31 = vmax.f32 %v2222_v6, 0.0  ;;  %v2425_v14 = vmax.f32 %v2335_v16, 0.0 }
 0x317   : > { %v2228_v9 = vadd.f32 %v2227_v32, %v4180_v34  ;;  %v2341_v19 = vadd.f32 %v2340_v10, %v4180_v34  ;;  %v2424_v33 = vmax.f32 %v2224_v11, 0.0  ;;  %v2426_v20 = vmax.f32 %v2337_v18, 0.0 }
 0x318   : > { %v2431_v2 = vmax.f32 %v2226_v5, 0.0  ;;  %v2433_v37 = vmax.f32 %v2339_v45, 0.0 }
 0x319   : > { %v2432_v56 = vmax.f32 %v2228_v9, 0.0  ;;  %v2434_v1 = vmax.f32 %v2341_v19, 0.0 }
 0x31a   : > { %v2544_v25 = vpack.c.bf16 %v2431_v2, %v2423_v31  ;;  %v2546_v36 = vpack.c.bf16 %v2433_v37, %v2425_v14 }
 0x31b   : > { %v2545_v8 = vpack.c.bf16 %v2432_v56, %v2424_v33  ;;  %v2547_v60 = vpack.c.bf16 %v2434_v1, %v2426_v20  ;;  %v2231_v52 = vpop.f32.mrb[104].mxu0  ;;  %v2344_v39 = vpop.f32.mrb[104].mxu1 }
 0x31c   : > { %v2232_v7 = vadd.f32 %v2231_v52, %v4194_v42  ;;  %v2345_v12 = vadd.f32 %v2344_v39, %v4194_v42  ;;  %v2233_v43 = vpop.f32.mrb[105].mxu0  ;;  %v2346_v34 = vpop.f32.mrb[105].mxu1 }
 0x31d   : > { %v2234_v47 = vadd.f32 %v2233_v43, %v4194_v42  ;;  %v2347_v44 = vadd.f32 %v2346_v34, %v4194_v42  ;;  %v2235_v48 = vpop.f32.mrb[106].mxu0  ;;  %v2348_v61 = vpop.f32.mrb[106].mxu1  ;;  %2680 = vmatprep.subr.bf16.mxu0 %v2545_v8  ;;  %2721 = vmatprep.subr.bf16.mxu1 %v2547_v60 }
 0x31e   : > { %v2236_v17 = vadd.f32 %v2235_v48, %v4192_v22  ;;  %v2349_v63 = vadd.f32 %v2348_v61, %v4192_v22  ;;  %v2237_v55 = vpop.f32.mrb[107].mxu0  ;;  %v2350_v53 = vpop.f32.mrb[107].mxu1  ;;  %2681 = vmatpush1.bf16.msra.mxu0 %v2544_v25  ;;  %2722 = vmatpush1.bf16.msra.mxu1 %v2546_v36  ;;  %v2439_v21 = vmax.f32 %v2232_v7, 0.0  ;;  %v2441_v35 = vmax.f32 %v2345_v12, 0.0 }
 0x31f   : > { %v2238_v54 = vadd.f32 %v2237_v55, %v4192_v22  ;;  %v2351_v46 = vadd.f32 %v2350_v53, %v4192_v22  ;;  %v2440_v24 = vmax.f32 %v2234_v47, 0.0  ;;  %v2442_v57 = vmax.f32 %v2347_v44, 0.0 }
 0x320   : > { %v2447_v26 = vmax.f32 %v2236_v17, 0.0  ;;  %v2449_v42 = vmax.f32 %v2349_v63, 0.0 }
 0x321   : > { %v2448_v23 = vmax.f32 %v2238_v54, 0.0  ;;  %v2450_v28 = vmax.f32 %v2351_v46, 0.0 }
 0x322   : > { %v2552_v15 = vpack.c.bf16 %v2447_v26, %v2439_v21  ;;  %v2554_v0 = vpack.c.bf16 %v2449_v42, %v2441_v35 }
 0x323   : > { %v2553_v6 = vpack.c.bf16 %v2448_v23, %v2440_v24  ;;  %v2555_v16 = vpack.c.bf16 %v2450_v28, %v2442_v57  ;;  %v2241_v4 = vpop.f32.mrb[108].mxu0  ;;  %v2354_v49 = vpop.f32.mrb[108].mxu1 }
 0x324   : > { %v2242_v11 = vadd.f32 %v2241_v4, %v4206_v59  ;;  %v2355_v18 = vadd.f32 %v2354_v49, %v4206_v59  ;;  %v2243_v50 = vpop.f32.mrb[109].mxu0  ;;  %v2356_v22 = vpop.f32.mrb[109].mxu1 }
 0x325   : > { %v2244_v62 = vadd.f32 %v2243_v50, %v4206_v59  ;;  %v2357_v5 = vadd.f32 %v2356_v22, %v4206_v59  ;;  %v2245_v45 = vpop.f32.mrb[110].mxu0  ;;  %v2358_v32 = vpop.f32.mrb[110].mxu1  ;;  %2682 = vmatprep.subr.bf16.mxu0 %v2553_v6  ;;  %2723 = vmatprep.subr.bf16.mxu1 %v2555_v16 }
 0x326   : > { %v2246_v10 = vadd.f32 %v2245_v45, %v4204_v29  ;;  %v2359_v9 = vadd.f32 %v2358_v32, %v4204_v29  ;;  %v2247_v19 = vpop.f32.mrb[111].mxu0  ;;  %v2360_v31 = vpop.f32.mrb[111].mxu1  ;;  %2683 = vmatpush1.bf16.msra.mxu0 %v2552_v15  ;;  %2724 = vmatpush1.bf16.msra.mxu1 %v2554_v0  ;;  %v2455_v37 = vmax.f32 %v2242_v11, 0.0  ;;  %v2457_v33 = vmax.f32 %v2355_v18, 0.0 }
 0x327   : > { %v2248_v14 = vadd.f32 %v2247_v19, %v4204_v29  ;;  %v2361_v2 = vadd.f32 %v2360_v31, %v4204_v29  ;;  %v2456_v56 = vmax.f32 %v2244_v62, 0.0  ;;  %v2458_v1 = vmax.f32 %v2357_v5, 0.0 }
 0x328   : > { %v2463_v20 = vmax.f32 %v2246_v10, 0.0  ;;  %v2465_v59 = vmax.f32 %v2359_v9, 0.0 }
 0x329   : > { %v2464_v25 = vmax.f32 %v2248_v14, 0.0  ;;  %v2466_v36 = vmax.f32 %v2361_v2, 0.0 }
 0x32a   : > { %v2560_v8 = vpack.c.bf16 %v2463_v20, %v2455_v37  ;;  %v2562_v60 = vpack.c.bf16 %v2465_v59, %v2457_v33 }
 0x32b   : > { %v2561_v52 = vpack.c.bf16 %v2464_v25, %v2456_v56  ;;  %v2563_v39 = vpack.c.bf16 %v2466_v36, %v2458_v1  ;;  %v2251_v7 = vpop.f32.mrb[112].mxu0  ;;  %v2364_v12 = vpop.f32.mrb[112].mxu1 }
 0x32c   : > { %v2252_v43 = vadd.f32 %v2251_v7, %v4218_v27  ;;  %v2365_v34 = vadd.f32 %v2364_v12, %v4218_v27  ;;  %v2253_v47 = vpop.f32.mrb[113].mxu0  ;;  %v2366_v29 = vpop.f32.mrb[113].mxu1 }
 0x32d   : > { %v2254_v44 = vadd.f32 %v2253_v47, %v4218_v27  ;;  %v2367_v48 = vadd.f32 %v2366_v29, %v4218_v27  ;;  %v2255_v61 = vpop.f32.mrb[114].mxu0  ;;  %v2368_v17 = vpop.f32.mrb[114].mxu1  ;;  %2684 = vmatprep.subr.bf16.mxu0 %v2561_v52  ;;  %2725 = vmatprep.subr.bf16.mxu1 %v2563_v39 }
 0x32e   : > { %v2256_v63 = vadd.f32 %v2255_v61, %v4216_v30  ;;  %v2369_v55 = vadd.f32 %v2368_v17, %v4216_v30  ;;  %v2257_v53 = vpop.f32.mrb[115].mxu0  ;;  %v2370_v54 = vpop.f32.mrb[115].mxu1  ;;  %2685 = vmatpush1.bf16.msra.mxu0 %v2560_v8  ;;  %2726 = vmatpush1.bf16.msra.mxu1 %v2562_v60  ;;  %v2471_v35 = vmax.f32 %v2252_v43, 0.0  ;;  %v2473_v26 = vmax.f32 %v2365_v34, 0.0 }
 0x32f   : > { %v2258_v46 = vadd.f32 %v2257_v53, %v4216_v30  ;;  %v2371_v21 = vadd.f32 %v2370_v54, %v4216_v30  ;;  %v2472_v24 = vmax.f32 %v2254_v44, 0.0  ;;  %v2474_v57 = vmax.f32 %v2367_v48, 0.0 }
 0x330   : > { %v2479_v42 = vmax.f32 %v2256_v63, 0.0  ;;  %v2481_v27 = vmax.f32 %v2369_v55, 0.0 }
 0x331   : > { %v2480_v23 = vmax.f32 %v2258_v46, 0.0  ;;  %v2482_v28 = vmax.f32 %v2371_v21, 0.0 }
 0x332   : > { %v2568_v15 = vpack.c.bf16 %v2479_v42, %v2471_v35  ;;  %v2570_v0 = vpack.c.bf16 %v2481_v27, %v2473_v26 }
 0x333   : > { %v2569_v6 = vpack.c.bf16 %v2480_v23, %v2472_v24  ;;  %v2571_v16 = vpack.c.bf16 %v2482_v28, %v2474_v57  ;;  %v2261_v4 = vpop.f32.mrb[116].mxu0  ;;  %v2374_v49 = vpop.f32.mrb[116].mxu1 }
 0x334   : > { %v2262_v11 = vadd.f32 %v2261_v4, %v4230_v38  ;;  %v2375_v18 = vadd.f32 %v2374_v49, %v4230_v38  ;;  %v2263_v50 = vpop.f32.mrb[117].mxu0  ;;  %v2376_v30 = vpop.f32.mrb[117].mxu1 }
 0x335   : > { %v2264_v22 = vadd.f32 %v2263_v50, %v4230_v38  ;;  %v2377_v62 = vadd.f32 %v2376_v30, %v4230_v38  ;;  %v2265_v5 = vpop.f32.mrb[118].mxu0  ;;  %v2378_v45 = vpop.f32.mrb[118].mxu1  ;;  %2686 = vmatprep.subr.bf16.mxu0 %v2569_v6  ;;  %2727 = vmatprep.subr.bf16.mxu1 %v2571_v16 }
 0x336   : > { %v2266_v32 = vadd.f32 %v2265_v5, %v4228_v40  ;;  %v2379_v10 = vadd.f32 %v2378_v45, %v4228_v40  ;;  %v2267_v9 = vpop.f32.mrb[119].mxu0  ;;  %v2380_v19 = vpop.f32.mrb[119].mxu1  ;;  %2687 = vmatpush1.bf16.msra.mxu0 %v2568_v15  ;;  %2728 = vmatpush1.bf16.msra.mxu1 %v2570_v0  ;;  %v2487_v2 = vmax.f32 %v2262_v11, 0.0  ;;  %v2489_v37 = vmax.f32 %v2375_v18, 0.0 }
 0x337   : > { %v2268_v31 = vadd.f32 %v2267_v9, %v4228_v40  ;;  %v2381_v14 = vadd.f32 %v2380_v19, %v4228_v40  ;;  %v2488_v20 = vmax.f32 %v2264_v22, 0.0  ;;  %v2490_v59 = vmax.f32 %v2377_v62, 0.0 }
 0x338   : > { %v2495_v33 = vmax.f32 %v2266_v32, 0.0  ;;  %v2497_v38 = vmax.f32 %v2379_v10, 0.0 }
 0x339   : > { %v2496_v56 = vmax.f32 %v2268_v31, 0.0  ;;  %v2498_v1 = vmax.f32 %v2381_v14, 0.0 }
 0x33a   : > { %v2576_v25 = vpack.c.bf16 %v2495_v33, %v2487_v2  ;;  %v2578_v36 = vpack.c.bf16 %v2497_v38, %v2489_v37 }
 0x33b   : > { %v2577_v8 = vpack.c.bf16 %v2496_v56, %v2488_v20  ;;  %v2579_v60 = vpack.c.bf16 %v2498_v1, %v2490_v59  ;;  %v2271_v52 = vpop.f32.mrb[120].mxu0  ;;  %v2384_v39 = vpop.f32.mrb[120].mxu1 }
 0x33c   : > { %v2272_v7 = vadd.f32 %v2271_v52, %v4242_v58  ;;  %v2385_v12 = vadd.f32 %v2384_v39, %v4242_v58  ;;  %v2273_v43 = vpop.f32.mrb[121].mxu0  ;;  %v2386_v40 = vpop.f32.mrb[121].mxu1 }
 0x33d   : > { %v2274_v34 = vadd.f32 %v2273_v43, %v4242_v58  ;;  %v2387_v47 = vadd.f32 %v2386_v40, %v4242_v58  ;;  %v2275_v29 = vpop.f32.mrb[122].mxu0  ;;  %v2388_v44 = vpop.f32.mrb[122].mxu1  ;;  %2688 = vmatprep.subr.bf16.mxu0 %v2577_v8  ;;  %2729 = vmatprep.subr.bf16.mxu1 %v2579_v60  ;;  %v4403_v8 = vld [vmem:[#allocation5_spill] sm:$0xff] }
 0x33e   : > { %v2276_v48 = vadd.f32 %v2275_v29, %v4240_v51  ;;  %v2389_v61 = vadd.f32 %v2388_v44, %v4240_v51  ;;  %v2277_v17 = vpop.f32.mrb[123].mxu0  ;;  %v2390_v63 = vpop.f32.mrb[123].mxu1  ;;  %2689 = vmatpush1.bf16.msra.mxu0 %v2576_v25  ;;  %2730 = vmatpush1.bf16.msra.mxu1 %v2578_v36  ;;  %v2503_v54 = vmax.f32 %v2272_v7, 0.0  ;;  %v2505_v46 = vmax.f32 %v2385_v12, 0.0 }
 0x33f   : > { %v2278_v55 = vadd.f32 %v2277_v17, %v4240_v51  ;;  %v2391_v53 = vadd.f32 %v2390_v63, %v4240_v51  ;;  %v2504_v35 = vmax.f32 %v2274_v34, 0.0  ;;  %v2506_v26 = vmax.f32 %v2387_v47, 0.0 }
 0x340   : > { %v2511_v21 = vmax.f32 %v2276_v48, 0.0  ;;  %v2513_v58 = vmax.f32 %v2389_v61, 0.0 }
 0x341   : > { %v2512_v42 = vmax.f32 %v2278_v55, 0.0  ;;  %v2514_v27 = vmax.f32 %v2391_v53, 0.0 }
 0x342   : > { %v2584_v24 = vpack.c.bf16 %v2511_v21, %v2503_v54  ;;  %v2586_v57 = vpack.c.bf16 %v2513_v58, %v2505_v46 }
 0x343   : > { %v2585_v23 = vpack.c.bf16 %v2512_v42, %v2504_v35  ;;  %v2587_v28 = vpack.c.bf16 %v2514_v27, %v2506_v26  ;;  %v2281_v15 = vpop.f32.mrb[124].mxu0  ;;  %v2394_v0 = vpop.f32.mrb[124].mxu1 }
 0x344   : > { %v2282_v6 = vadd.f32 %v2281_v15, %v4254_v13  ;;  %v2395_v16 = vadd.f32 %v2394_v0, %v4254_v13  ;;  %v2283_v4 = vpop.f32.mrb[125].mxu0  ;;  %v2396_v51 = vpop.f32.mrb[125].mxu1 }
 0x345   : > { %v2284_v49 = vadd.f32 %v2283_v4, %v4254_v13  ;;  %v2397_v11 = vadd.f32 %v2396_v51, %v4254_v13  ;;  %v2285_v18 = vpop.f32.mrb[126].mxu0  ;;  %v2398_v50 = vpop.f32.mrb[126].mxu1  ;;  %2690 = vmatprep.subr.bf16.mxu0 %v2585_v23  ;;  %2731 = vmatprep.subr.bf16.mxu1 %v2587_v28 }
 0x346   : > { %v2286_v30 = vadd.f32 %v2285_v18, %v4252_v41  ;;  %v2399_v22 = vadd.f32 %v2398_v50, %v4252_v41  ;;  %v2287_v62 = vpop.f32.mrb[127].mxu0  ;;  %v2400_v5 = vpop.f32.mrb[127].mxu1  ;;  %2691 = vmatpush1.bf16.msra.mxu0 %v2584_v24  ;;  %2732 = vmatpush1.bf16.msra.mxu1 %v2586_v57  ;;  %v2519_v10 = vmax.f32 %v2282_v6, 0.0  ;;  %v2521_v9 = vmax.f32 %v2395_v16, 0.0 }
 0x347   : > { %v2288_v45 = vadd.f32 %v2287_v62, %v4252_v41  ;;  %v2401_v32 = vadd.f32 %v2400_v5, %v4252_v41  ;;  %v2520_v31 = vmax.f32 %v2284_v49, 0.0  ;;  %v2522_v14 = vmax.f32 %v2397_v11, 0.0 }
 0x348   : > { %v2527_v19 = vmax.f32 %v2286_v30, 0.0  ;;  %v2529_v13 = vmax.f32 %v2399_v22, 0.0  ;;  %v3042_v41 = vmov 1966171168  }
 0x349   : > { %v2528_v2 = vmax.f32 %v2288_v45, 0.0  ;;  %v2530_v37 = vmax.f32 %v2401_v32, 0.0  ;;  %v2773_v56 = vunpack.c.l.s4 %v3042_v41 }
 0x34a   : > { %v2592_v33 = vpack.c.bf16 %v2527_v19, %v2519_v10  ;;  %v2594_v38 = vpack.c.bf16 %v2529_v13, %v2521_v9 }
 0x34b   : > { %v2593_v20 = vpack.c.bf16 %v2528_v2, %v2520_v31  ;;  %v2595_v59 = vpack.c.bf16 %v2530_v37, %v2522_v14  ;;  %v2774_v1 = vunpack.c.0.s8 %v2773_v56 }
 0x34d   : > { %2692 = vmatprep.subr.bf16.mxu0 %v2593_v20  ;;  %2733 = vmatprep.subr.bf16.mxu1 %v2595_v59  ;;  %v2777_v60 = vsub.s32 %v2774_v1, %v4403_v8 }
 0x34e   : > { %2693 = vmatpush1.bf16.msra.mxu0 %v2592_v33  ;;  %2734 = vmatpush1.bf16.msra.mxu1 %v2594_v38 }
 0x351   : > { %2711 = vmatmul.mubr.bf16.vlgmr.msra.gmra.mrb[132].mxu0 %v4273_v3  ;;  %2752 = vmatmul.mubr.bf16.vlgmr.msra.gmra.mrb[132].mxu1 %v4273_v3 }
 0x3e4   : > { %v2630_v25 = vpop.f32.mrb[128].mxu0  ;;  %v2671_v36 = vpop.f32.mrb[128].mxu1 }
 0x3e5   : > { %v2632_v52 = vpop.f32.mrb[129].mxu0  ;;  %v2673_v39 = vpop.f32.mrb[129].mxu1 }
 0x3e6   : > { %v2768_v7 = vcombine.low %v2630_v25, %v2632_v52  ;;  %v2769_v12 = vcombine.low %v2671_v36, %v2673_v39  ;;  %v2634_v43 = vpop.f32.mrb[130].mxu0  ;;  %v2675_v40 = vpop.f32.mrb[130].mxu1 }
 0x3e7   : > { %v2635_v34 = vpop.f32.mrb[131].mxu0  ;;  %v2676_v47 = vpop.f32.mrb[131].mxu1 }
 0x3e8   : > { %v2778_v29 = vrot.slane %v2768_v7, %v2777_v60  ;;  %v2785_v44 = vrot.slane %v2769_v12, %v2777_v60 }
 0x3ea   : > { %v2800_v48 = vcombine.low %v2778_v29, %v2785_v44 }
 0x3ec   : > { %v2808_v27 = vrot.slane %v2800_v48, %v2777_v60 }
 0x424   : > { %v2712_v3 = vpop.f32.mrb[132].mxu0  ;;  %v2753_v61 = vpop.f32.mrb[132].mxu1 }
 0x425   : > { %v2714_v17 = vpop.f32.mrb[133].mxu0  ;;  %v2755_v63 = vpop.f32.mrb[133].mxu1 }
 0x426   : > { %v2770_v55 = vcombine.low %v2712_v3, %v2714_v17  ;;  %v2771_v53 = vcombine.low %v2753_v61, %v2755_v63  ;;  %v2716_v54 = vpop.f32.mrb[134].mxu0  ;;  %v2757_v46 = vpop.f32.mrb[134].mxu1 }
 0x427   : > { %v2717_v21 = vpop.f32.mrb[135].mxu0  ;;  %v2758_v58 = vpop.f32.mrb[135].mxu1 }
 0x428   : > { %v2792_v35 = vrot.slane %v2770_v55, %v2777_v60  ;;  %v2799_v26 = vrot.slane %v2771_v53, %v2777_v60 }
 0x42a   : > { %v2801_v42 = vcombine.low %v2792_v35, %v2799_v26 }
 0x42c   : > { %v2815_v24 = vrot.slane %v2801_v42, %v2777_v60 }
 0x42e   : > { %v2816_v57 = vcombine.low %v2808_v27, %v2815_v24 }
 0x430   : > { %2818 = vst [vmem:[%s297_s18] sm:$0xff] %v2816_v57 }
 0x431   : > { %2990 = shalt.err (!%p2987_p3)
}
 0x432   : > { %s2991_s10 = scalar_lea.hbm %s4345_s21, 128  ;;  %s2995_s17 = scalar_lea.hbm %s4395_s8, 512 }
 0x433   : > { %p2992_p4 = scmp.ne.s32.totalorder %s4345_s21, %s2991_s10  ;;  %p2996_p9 = scmp.lt.u32.totalorder %s4345_s21, %s4395_s8 }
 0x434   : > { %p2997_p10 = scmp.lt.u32.totalorder %s2995_s17, %s2991_s10  ;;  %p2999_p12 = scmp.lt.u32.totalorder %s2991_s10, %s4345_s21 }
 0x435   : > { %p2993_p7 = pnand %p2992_p4, %p3127_p5 }
 0x436   : > { %p2998_p11 = por %p2997_p10, %p2996_p9 }
 0x437   : > { %p2994_p8 = pneg %p2993_p7 }
 0x438   : > { %p3000_p13 = por %p2999_p12, %p2998_p11 }
 0x43a   : > { %p3001_p0 = pnand %p3000_p13, %p2994_p8 }
 0x43c   : > { %3004 = shalt.err (!%p3001_p0)
}
 0x43d   : > { %2918 = dma.vmem_to_hbm [thread:$0]  (%p3127_p5), %s4347_s19, 128, %s4345_s21, %s2820_s22  }
 0x43e PF: > { %p2924_p1 = scmp.ge.s32.totalorder %s3039_s30, 2  ;;  %s2846_s20 = sand.u32 1, %s3027_s27  }
 0x43f   : > { %s2847_s23 = scalar_lea.sflag [#allocation3], %s2846_s20 }
 0x440   : > { %p2921_p2 = pnand %p2924_p1, %p3131_p6 }
 0x442   : > { %3022 = dma.done.wait (!%p2921_p2), %s2847_s23, 128  }
 0x443   : > { %3024 = vsyncadd (!%p2921_p2), %s2847_s23, 4294967168  ;;  %p18_p3 = scmp.ge.s32.totalorder %s3114_s11, 6   ;;  %s4404_s27 = smov %s3031_s28 }
 0x444   : > { %s4405_s28 = smov %s3035_s29  ;;  %s4406_s29 = smov %s3125_s14 }
 0x445   : > { %s4407_s30 = smov %s3114_s11  ;;  %20 = sbr.rel (!%p18_p3) target bundleno = 3 (0x3), region = 87 }
 0x44c   :  { %2852 = vsyncpa [#allocation3], 1 }
 0x44d   :  { %2854 = vsyncpa [#allocation3 + $0x1], 1 }

</bundles_post_ra>
